<compile_context>
chip_gen: v7x
topology: tpu7x:2x2x1
jax: 0.10.0
libtpu: 0.0.40
codegen_flags: <defaults>
</compile_context>

<pallas_src>
import functools
import math

import numpy as np
import jax
import jax.numpy as jnp
from jax.experimental import pallas as pl
from jax.experimental.pallas import tpu as pltpu


def _round_up(x, m):
    return ((x + m - 1) // m) * m


def _cdiv(a, b):
    return -(-a // b)


# ----------------------------------------------------------------------------
# Pallas kernel: per row-tile, gather the k*k shifted windows from a
# (tile + next tile) VMEM buffer and accumulate tap matmuls.
#   out[r, :] = sum_t  x_flat[r + off_t, :] @ W_t  + bias
# ----------------------------------------------------------------------------
def _cconvt_tap_kernel(xa_ref, xb_ref, w_ref, b_ref, out_ref, *,
                       tap_offsets, tm):
    # Two consecutive blocks of the flattened activation: rows
    # [i*tm, (i+2)*tm).  Widen to f32 in-register (no packed-dtype relayouts).
    xcat = jnp.concatenate(
        [xa_ref[...].astype(jnp.float32), xb_ref[...].astype(jnp.float32)],
        axis=0)                                           # (2*tm, 2Ci) f32
    acc = None
    for t, off in enumerate(tap_offsets):                 # static unrolled loop
        xt = xcat[off:off + tm, :]                        # (tm, 2Ci) static slice
        y = jnp.dot(xt, w_ref[t], preferred_element_type=jnp.float32)
        acc = y if acc is None else acc + y
    out_ref[...] = acc + b_ref[...]                       # (tm, 2Co) f32


def _pick_tm(n_rows, halo, *, target=1024, min_steps=8):
    # >= min_steps grid steps (keeps both v7x TensorCores fed with a pipeline),
    # capped at `target` rows (v6e sweet spot), multiple of 16, >= halo so the
    # two-consecutive-block window always contains every tap offset.
    tm = min(target, _round_up(max(_cdiv(n_rows, min_steps), 16), 16))
    tm = max(tm, _round_up(max(halo, 16), 16))
    return tm


def _cconvt_pallas(x_flat, w_all, b_pack, *, tap_offsets, tm):
    """x_flat: (R0, 2Ci) bf16; w_all: (k*k, 2Ci, 2Co) f32; b_pack: (1, 2Co) f32.
    Returns (R0, 2Co) f32."""
    R0, C2 = x_flat.shape
    KK, _, Co2 = w_all.shape

    nt = _cdiv(R0, tm)
    # One extra block of zero rows so the "next block" (i+1) always exists and
    # halo reads never go out of bounds.
    r_pad = (nt + 1) * tm
    x_flat = jnp.pad(x_flat, ((0, r_pad - R0), (0, 0)))

    kernel = functools.partial(_cconvt_tap_kernel, tap_offsets=tap_offsets,
                               tm=tm)
    out = pl.pallas_call(
        kernel,
        out_shape=jax.ShapeDtypeStruct((nt * tm, Co2), jnp.float32),
        grid=(nt,),
        in_specs=[
            pl.BlockSpec((tm, C2), lambda i: (i, 0)),        # rows of tile i
            pl.BlockSpec((tm, C2), lambda i: (i + 1, 0)),    # halo (next tile)
            pl.BlockSpec((KK, C2, Co2), lambda i: (0, 0, 0)),  # weights (resident)
            pl.BlockSpec((1, Co2), lambda i: (0, 0)),          # packed bias
        ],
        out_specs=pl.BlockSpec((tm, Co2), lambda i: (i, 0)),
        compiler_params=pltpu.CompilerParams(
            dimension_semantics=("parallel",)),
    )(x_flat, x_flat, w_all, b_pack)
    return out[:R0]


# ----------------------------------------------------------------------------
# CConvTranspose2d forward
# ----------------------------------------------------------------------------
def cconv_transpose2d(x, params, *, kernel_size, stride, padding=0,
                      output_padding=0):
    """x: (N, C_in, H, W, 2) float32.  Returns (N, C_out, H_out, W_out, 2)."""
    w_r, b_r, w_i, b_i = (params["w_real"], params["b_real"],
                          params["w_imag"], params["b_imag"])
    N, Ci, H, W, _ = x.shape
    Co = w_r.shape[1]
    kH = kW = kernel_size
    p = kernel_size - 1 - padding
    assert p >= 0, "kernel_size - 1 - padding must be >= 0 for this lowering"

    # --- dilated + padded activation, channels-last, real|imag packed --------
    xr, xi = x[..., 0], x[..., 1]                       # (N, Ci, H, W)
    xc = jnp.concatenate([xr, xi], axis=1)              # (N, 2Ci, H, W)
    xc = jnp.transpose(xc, (0, 2, 3, 1))                # (N, H, W, 2Ci)
    Hd, Wd = (H - 1) * stride + 1, (W - 1) * stride + 1
    xd = jnp.zeros((N, Hd, Wd, 2 * Ci), jnp.bfloat16)
    xd = xd.at[:, ::stride, ::stride, :].set(xc.astype(jnp.bfloat16))
    # TODO(synk): sub-pixel (stride x stride phase) decomposition would avoid
    # materializing/reading these dilation zeros (~4x activation traffic for
    # stride=2) at the cost of per-phase sub-kernels.
    xp = jnp.pad(xd, ((0, 0), (p, p + output_padding),
                      (p, p + output_padding), (0, 0)))
    Hp = Hd + 2 * p + output_padding
    Wp = Wd + 2 * p + output_padding
    Ho, Wo = Hp - kH + 1, Wp - kW + 1
    x_flat = xp.reshape(N * Hp * Wp, 2 * Ci)            # (R0, 2Ci) bf16

    # --- weights: flipped kernel, 2x2 real-block form, per-tap matrices ------
    wr_f = jnp.transpose(w_r[:, :, ::-1, ::-1], (2, 3, 0, 1))  # (kH,kW,Ci,Co)
    wi_f = jnp.transpose(w_i[:, :, ::-1, ::-1], (2, 3, 0, 1))
    w_top = jnp.concatenate([wr_f, wi_f], axis=-1)              # xr -> [re|im]
    w_bot = jnp.concatenate([-wi_f, wr_f], axis=-1)             # xi -> [re|im]
    w_all = jnp.concatenate([w_top, w_bot], axis=-2)            # (kH,kW,2Ci,2Co)
    w_all = w_all.reshape(kH * kW, 2 * Ci, 2 * Co).astype(jnp.float32)
    # Module semantics: each real ConvTranspose2d adds its own bias.
    b_pack = jnp.concatenate([b_r - b_i, b_r + b_i]).reshape(1, 2 * Co)

    # --- tap offsets in the flattened-row space and tiling -------------------
    tap_offsets = tuple(a * Wp + b for a in range(kH) for b in range(kW))
    halo = (kH - 1) * Wp + (kW - 1)
    R0 = N * Hp * Wp
    tm = _pick_tm(R0, halo)

    out_flat = _cconvt_pallas(x_flat, w_all, b_pack,
                              tap_offsets=tap_offsets, tm=tm)   # (R0, 2Co) f32

    # Valid output pixels are the (ho < Ho, wo < Wo) subset of padded positions.
    out = out_flat.reshape(N, Hp, Wp, 2 * Co)[:, :Ho, :Wo, :]
    out_r, out_i = out[..., :Co], out[..., Co:]
    # NCHW + trailing complex dim for module fidelity (a channels-last consumer
    # could skip this transpose).
    return jnp.transpose(jnp.stack([out_r, out_i], axis=-1), (0, 3, 1, 2, 4))


# ----------------------------------------------------------------------------
# Deterministic parameter init (xavier_uniform for weights, small uniform bias)
# ----------------------------------------------------------------------------
def init_params(key, in_channels, out_channels, kernel_size):
    kH = kW = kernel_size
    shape = (in_channels, out_channels, kH, kW)
    fan_in = out_channels * kH * kW    # PyTorch: dim 1 * receptive field
    fan_out = in_channels * kH * kW
    bound = math.sqrt(6.0 / (fan_in + fan_out))
    k_wr, k_wi, k_br, k_bi = jax.random.split(key, 4)
    return {
        "w_real": jax.random.uniform(k_wr, shape, jnp.float32, -bound, bound),
        "w_imag": jax.random.uniform(k_wi, shape, jnp.float32, -bound, bound),
        "b_real": jax.random.uniform(k_br, (out_channels,), jnp.float32, -0.1, 0.1),
        "b_imag": jax.random.uniform(k_bi, (out_channels,), jnp.float32, -0.1, 0.1),
    }


# ----------------------------------------------------------------------------
# Pure-JAX reference (lax conv with lhs_dilation) for a correctness check
# ----------------------------------------------------------------------------
def _convt_ref(x, w, b, stride, k, padding, output_padding):
    w_oihw = jnp.transpose(w[:, :, ::-1, ::-1], (1, 0, 2, 3))
    p = k - 1 - padding
    out = jax.lax.conv_general_dilated(
        x, w_oihw, window_strides=(1, 1),
        padding=[(p, p + output_padding), (p, p + output_padding)],
        lhs_dilation=(stride, stride), rhs_dilation=(1, 1),
        dimension_numbers=("NCHW", "OIHW", "NCHW"),
        precision=jax.lax.Precision.HIGHEST)
    return out + b[None, :, None, None]


def cconv_transpose2d_ref(x, params, *, kernel_size, stride, padding=0,
                          output_padding=0):
    xr, xi = x[..., 0], x[..., 1]
    args = dict(stride=stride, k=kernel_size, padding=padding,
                output_padding=output_padding)
    rr = _convt_ref(xr, params["w_real"], params["b_real"], **args)
    ii = _convt_ref(xi, params["w_imag"], params["b_imag"], **args)
    ri = _convt_ref(xr, params["w_imag"], params["b_imag"], **args)
    ir = _convt_ref(xi, params["w_real"], params["b_real"], **args)
    return jnp.stack([rr - ii, ri + ir], axis=-1)


if __name__ == "__main__":
    key = jax.random.PRNGKey(0)
    k_x, k_p = jax.random.split(key)

    # small shapes: batch=2, C_in=4, C_out=4, spatial 16x16, complex trailing dim
    N, Ci, Co, H, W = 2, 4, 4, 16, 16
    kernel_size, stride, padding, output_padding = 3, 2, 1, 1

    x = jax.random.normal(k_x, (N, Ci, H, W, 2), dtype=jnp.float32)
    params = init_params(k_p, Ci, Co, kernel_size)

    fwd = jax.jit(functools.partial(
        cconv_transpose2d, kernel_size=kernel_size, stride=stride,
        padding=padding, output_padding=output_padding))
    out = jax.block_until_ready(fwd(x, params))

    ref = cconv_transpose2d_ref(x, params, kernel_size=kernel_size,
                                stride=stride, padding=padding,
                                output_padding=output_padding)
    ref = jax.block_until_ready(ref)

    Ho = (H - 1) * stride - 2 * padding + kernel_size + output_padding
    Wo = (W - 1) * stride - 2 * padding + kernel_size + output_padding
    assert out.shape == (N, Co, Ho, Wo, 2), out.shape
    # bf16 activations in HBM with f32 compute/accumulation -> relaxed tolerance;
    # still far tighter than any indexing/semantics bug (which gives O(1) errors).
    np.testing.assert_allclose(np.asarray(out), np.asarray(ref),
                               rtol=3e-2, atol=3e-2)
    print("KERNEL_OK")
</pallas_src>

<mosaic_0001>
module attributes {stable_mosaic.version = 11 : i64} {
  func.func @_cconvt_tap_kernel(%arg0: i32, %arg1: memref<304x8xbf16, #tpu.memory_space<vmem>>, %arg2: memref<304x8xbf16, #tpu.memory_space<vmem>>, %arg3: memref<9x8x8xf32, #tpu.memory_space<vmem>>, %arg4: memref<1x8xf32, #tpu.memory_space<vmem>>, %arg5: memref<304x8xf32, #tpu.memory_space<vmem>>) attributes {dimension_semantics = [#tpu.dimension_semantics<parallel>], iteration_bounds = array<i64: 8>, scalar_prefetch = 0 : i64, scratch_operands = 0 : i64, tpu.core_type = #tpu.core_type<tc>, window_params = [{transform_indices = @transform_0, window_bounds = array<i64: 304, 8>}, {transform_indices = @transform_1, window_bounds = array<i64: 304, 8>}, {pipeline_mode = #tpu.pipeline_mode<synchronous>, transform_indices = @transform_2, window_bounds = array<i64: 9, 8, 8>}, {pipeline_mode = #tpu.pipeline_mode<synchronous>, transform_indices = @transform_3, window_bounds = array<i64: 1, 8>}, {transform_indices = @transform_4, window_bounds = array<i64: 304, 8>}]} {
    %c0 = arith.constant 0 : index
    %c0_0 = arith.constant 0 : index
    %0 = vector.load %arg1[%c0, %c0_0] : memref<304x8xbf16, #tpu.memory_space<vmem>>, vector<304x8xbf16>
    %1 = arith.extf %0 : vector<304x8xbf16> to vector<304x8xf32>
    %c0_1 = arith.constant 0 : index
    %c0_2 = arith.constant 0 : index
    %2 = vector.load %arg2[%c0_1, %c0_2] : memref<304x8xbf16, #tpu.memory_space<vmem>>, vector<304x8xbf16>
    %3 = arith.extf %2 : vector<304x8xbf16> to vector<304x8xf32>
    %4 = tpu.concatenate %1, %3 in 0 : vector<304x8xf32>, vector<304x8xf32> -> vector<608x8xf32>
    %5 = vector.extract_strided_slice %4 {offsets = [0, 0], sizes = [304, 8], strides = [1, 1]} : vector<608x8xf32> to vector<304x8xf32>
    %c0_3 = arith.constant 0 : index
    %c0_4 = arith.constant 0 : index
    %c0_5 = arith.constant 0 : index
    %6 = vector.load %arg3[%c0_3, %c0_4, %c0_5] : memref<9x8x8xf32, #tpu.memory_space<vmem>>, vector<1x8x8xf32>
    %7 = vector.shape_cast %6 : vector<1x8x8xf32> to vector<8x8xf32>
    %cst = arith.constant dense<0.000000e+00> : vector<304x8xf32>
    %8 = tpu.matmul %5, %7, %cst {dimension_numbers = #tpu.dot_dimension_numbers<[1], [0], [0], [1], [0, 0, 1, 1], [], []>} : vector<304x8xf32>, vector<8x8xf32>, vector<304x8xf32> -> vector<304x8xf32>
    %9 = vector.extract_strided_slice %4 {offsets = [1, 0], sizes = [304, 8], strides = [1, 1]} : vector<608x8xf32> to vector<304x8xf32>
    %c1 = arith.constant 1 : index
    %c0_6 = arith.constant 0 : index
    %c0_7 = arith.constant 0 : index
    %10 = vector.load %arg3[%c1, %c0_6, %c0_7] : memref<9x8x8xf32, #tpu.memory_space<vmem>>, vector<1x8x8xf32>
    %11 = vector.shape_cast %10 : vector<1x8x8xf32> to vector<8x8xf32>
    %cst_8 = arith.constant dense<0.000000e+00> : vector<304x8xf32>
    %12 = tpu.matmul %9, %11, %cst_8 {dimension_numbers = #tpu.dot_dimension_numbers<[1], [0], [0], [1], [0, 0, 1, 1], [], []>} : vector<304x8xf32>, vector<8x8xf32>, vector<304x8xf32> -> vector<304x8xf32>
    %13 = arith.addf %8, %12 : vector<304x8xf32>
    %14 = vector.extract_strided_slice %4 {offsets = [2, 0], sizes = [304, 8], strides = [1, 1]} : vector<608x8xf32> to vector<304x8xf32>
    %c2 = arith.constant 2 : index
    %c0_9 = arith.constant 0 : index
    %c0_10 = arith.constant 0 : index
    %15 = vector.load %arg3[%c2, %c0_9, %c0_10] : memref<9x8x8xf32, #tpu.memory_space<vmem>>, vector<1x8x8xf32>
    %16 = vector.shape_cast %15 : vector<1x8x8xf32> to vector<8x8xf32>
    %cst_11 = arith.constant dense<0.000000e+00> : vector<304x8xf32>
    %17 = tpu.matmul %14, %16, %cst_11 {dimension_numbers = #tpu.dot_dimension_numbers<[1], [0], [0], [1], [0, 0, 1, 1], [], []>} : vector<304x8xf32>, vector<8x8xf32>, vector<304x8xf32> -> vector<304x8xf32>
    %18 = arith.addf %13, %17 : vector<304x8xf32>
    %19 = vector.extract_strided_slice %4 {offsets = [34, 0], sizes = [304, 8], strides = [1, 1]} : vector<608x8xf32> to vector<304x8xf32>
    %c3 = arith.constant 3 : index
    %c0_12 = arith.constant 0 : index
    %c0_13 = arith.constant 0 : index
    %20 = vector.load %arg3[%c3, %c0_12, %c0_13] : memref<9x8x8xf32, #tpu.memory_space<vmem>>, vector<1x8x8xf32>
    %21 = vector.shape_cast %20 : vector<1x8x8xf32> to vector<8x8xf32>
    %cst_14 = arith.constant dense<0.000000e+00> : vector<304x8xf32>
    %22 = tpu.matmul %19, %21, %cst_14 {dimension_numbers = #tpu.dot_dimension_numbers<[1], [0], [0], [1], [0, 0, 1, 1], [], []>} : vector<304x8xf32>, vector<8x8xf32>, vector<304x8xf32> -> vector<304x8xf32>
    %23 = arith.addf %18, %22 : vector<304x8xf32>
    %24 = vector.extract_strided_slice %4 {offsets = [35, 0], sizes = [304, 8], strides = [1, 1]} : vector<608x8xf32> to vector<304x8xf32>
    %c4 = arith.constant 4 : index
    %c0_15 = arith.constant 0 : index
    %c0_16 = arith.constant 0 : index
    %25 = vector.load %arg3[%c4, %c0_15, %c0_16] : memref<9x8x8xf32, #tpu.memory_space<vmem>>, vector<1x8x8xf32>
    %26 = vector.shape_cast %25 : vector<1x8x8xf32> to vector<8x8xf32>
    %cst_17 = arith.constant dense<0.000000e+00> : vector<304x8xf32>
    %27 = tpu.matmul %24, %26, %cst_17 {dimension_numbers = #tpu.dot_dimension_numbers<[1], [0], [0], [1], [0, 0, 1, 1], [], []>} : vector<304x8xf32>, vector<8x8xf32>, vector<304x8xf32> -> vector<304x8xf32>
    %28 = arith.addf %23, %27 : vector<304x8xf32>
    %29 = vector.extract_strided_slice %4 {offsets = [36, 0], sizes = [304, 8], strides = [1, 1]} : vector<608x8xf32> to vector<304x8xf32>
    %c5 = arith.constant 5 : index
    %c0_18 = arith.constant 0 : index
    %c0_19 = arith.constant 0 : index
    %30 = vector.load %arg3[%c5, %c0_18, %c0_19] : memref<9x8x8xf32, #tpu.memory_space<vmem>>, vector<1x8x8xf32>
    %31 = vector.shape_cast %30 : vector<1x8x8xf32> to vector<8x8xf32>
    %cst_20 = arith.constant dense<0.000000e+00> : vector<304x8xf32>
    %32 = tpu.matmul %29, %31, %cst_20 {dimension_numbers = #tpu.dot_dimension_numbers<[1], [0], [0], [1], [0, 0, 1, 1], [], []>} : vector<304x8xf32>, vector<8x8xf32>, vector<304x8xf32> -> vector<304x8xf32>
    %33 = arith.addf %28, %32 : vector<304x8xf32>
    %34 = vector.extract_strided_slice %4 {offsets = [68, 0], sizes = [304, 8], strides = [1, 1]} : vector<608x8xf32> to vector<304x8xf32>
    %c6 = arith.constant 6 : index
    %c0_21 = arith.constant 0 : index
    %c0_22 = arith.constant 0 : index
    %35 = vector.load %arg3[%c6, %c0_21, %c0_22] : memref<9x8x8xf32, #tpu.memory_space<vmem>>, vector<1x8x8xf32>
    %36 = vector.shape_cast %35 : vector<1x8x8xf32> to vector<8x8xf32>
    %cst_23 = arith.constant dense<0.000000e+00> : vector<304x8xf32>
    %37 = tpu.matmul %34, %36, %cst_23 {dimension_numbers = #tpu.dot_dimension_numbers<[1], [0], [0], [1], [0, 0, 1, 1], [], []>} : vector<304x8xf32>, vector<8x8xf32>, vector<304x8xf32> -> vector<304x8xf32>
    %38 = arith.addf %33, %37 : vector<304x8xf32>
    %39 = vector.extract_strided_slice %4 {offsets = [69, 0], sizes = [304, 8], strides = [1, 1]} : vector<608x8xf32> to vector<304x8xf32>
    %c7 = arith.constant 7 : index
    %c0_24 = arith.constant 0 : index
    %c0_25 = arith.constant 0 : index
    %40 = vector.load %arg3[%c7, %c0_24, %c0_25] : memref<9x8x8xf32, #tpu.memory_space<vmem>>, vector<1x8x8xf32>
    %41 = vector.shape_cast %40 : vector<1x8x8xf32> to vector<8x8xf32>
    %cst_26 = arith.constant dense<0.000000e+00> : vector<304x8xf32>
    %42 = tpu.matmul %39, %41, %cst_26 {dimension_numbers = #tpu.dot_dimension_numbers<[1], [0], [0], [1], [0, 0, 1, 1], [], []>} : vector<304x8xf32>, vector<8x8xf32>, vector<304x8xf32> -> vector<304x8xf32>
    %43 = arith.addf %38, %42 : vector<304x8xf32>
    %44 = vector.extract_strided_slice %4 {offsets = [70, 0], sizes = [304, 8], strides = [1, 1]} : vector<608x8xf32> to vector<304x8xf32>
    %c8 = arith.constant 8 : index
    %c0_27 = arith.constant 0 : index
    %c0_28 = arith.constant 0 : index
    %45 = vector.load %arg3[%c8, %c0_27, %c0_28] : memref<9x8x8xf32, #tpu.memory_space<vmem>>, vector<1x8x8xf32>
    %46 = vector.shape_cast %45 : vector<1x8x8xf32> to vector<8x8xf32>
    %cst_29 = arith.constant dense<0.000000e+00> : vector<304x8xf32>
    %47 = tpu.matmul %44, %46, %cst_29 {dimension_numbers = #tpu.dot_dimension_numbers<[1], [0], [0], [1], [0, 0, 1, 1], [], []>} : vector<304x8xf32>, vector<8x8xf32>, vector<304x8xf32> -> vector<304x8xf32>
    %48 = arith.addf %43, %47 : vector<304x8xf32>
    %c0_30 = arith.constant 0 : index
    %c0_31 = arith.constant 0 : index
    %49 = vector.load %arg4[%c0_30, %c0_31] : memref<1x8xf32, #tpu.memory_space<vmem>>, vector<1x8xf32>
    %50 = vector.broadcast %49 : vector<1x8xf32> to vector<304x8xf32>
    %51 = arith.addf %48, %50 : vector<304x8xf32>
    %c0_32 = arith.constant 0 : index
    %c0_33 = arith.constant 0 : index
    %52 = vector.load %arg5[%c0_32, %c0_33] : memref<304x8xf32, #tpu.memory_space<vmem>>, vector<304x8xf32>
    tpu.vector_store %arg5[%c0_32, %c0_33], %51 {strides = array<i32>} : memref<304x8xf32, #tpu.memory_space<vmem>>, vector<304x8xf32>,
    return
  }
  func.func @transform_0(%arg0: i32) -> (i32, i32) {
    %c0_i32 = arith.constant 0 : i32
    %c0_i32_0 = arith.constant 0 : i32
    return %arg0, %c0_i32 : i32, i32
  }
  func.func @transform_1(%arg0: i32) -> (i32, i32) {
    %c1_i32 = arith.constant 1 : i32
    %0 = arith.addi %arg0, %c1_i32 : i32
    %c0_i32 = arith.constant 0 : i32
    %c0_i32_0 = arith.constant 0 : i32
    return %0, %c0_i32 : i32, i32
  }
  func.func @transform_2(%arg0: i32) -> (i32, i32, i32) {
    %c0_i32 = arith.constant 0 : i32
    %c0_i32_0 = arith.constant 0 : i32
    %c0_i32_1 = arith.constant 0 : i32
    %c0_i32_2 = arith.constant 0 : i32
    return %c0_i32, %c0_i32_0, %c0_i32_1 : i32, i32, i32
  }
  func.func @transform_3(%arg0: i32) -> (i32, i32) {
    %c0_i32 = arith.constant 0 : i32
    %c0_i32_0 = arith.constant 0 : i32
    %c0_i32_1 = arith.constant 0 : i32
    return %c0_i32, %c0_i32_0 : i32, i32
  }
  func.func @transform_4(%arg0: i32) -> (i32, i32) {
    %c0_i32 = arith.constant 0 : i32
    %c0_i32_0 = arith.constant 0 : i32
    return %arg0, %c0_i32 : i32, i32
  }
}

</mosaic_0001>

<bundles_post_ra>
// kernel: cconv_transpose2d.1
= control target key start
LH: loop header
LB: loop body
LE: loop exit
PB: predicated region body
PF: predicated region fallthrough
CT: control target
= control target key end

     0   :  { %s5837_s15 = smov 0   ;;  %s7355_s0 = inlined_call_operand.vmem [shape: bf16[2736,8], index: 0, kind: input, shape index: {}, may-alias: {0,1}]   ;;  %s7356_s1 = inlined_call_operand.vmem [shape: bf16[2736,8], index: 1, kind: input, shape index: {}, may-alias: {0,1}]   ;;  %s7357_s2 = inlined_call_operand.vmem [shape: f32[9,8,8], index: 2, kind: input, shape index: {}]   ;;  %s7358_s3 = inlined_call_operand.vmem [shape: f32[1,8], index: 3, kind: input, shape index: {}]   ;;  %s7359_s4 = inlined_call_operand.vmem [shape: f32[2432,8], index: 4, kind: output, shape index: {}]  }
   0x1 LB: > { %s4133_s16 = sadd.s32 4294967295, %s5810_s15   ;;  %p4137_p0 = scmp.ge.s32.totalorder %s5810_s15, 1  ;;  %s5810_s15 = sphi %s5837_s15, %s14_s15  }
   0x2   : > { %p178_p1 = scmp.lt.s32.totalorder %s5810_s15, 9 }
   0x4   : > { %p179_p2 = pnand %p4137_p0, %p178_p1 }
   0x6   : > { %182 = sbr.rel (%p179_p2) target bundleno = 586 (0x24a), region = 36 }
   0xd   : > { %v5848_v0 = vld [vmem:[%s7357_s2 + $0x20] sm:$0xff]  ;;  %v4141_v1 = vld [vmem:[%s7357_s2 + $0x8] sm:$0xff]  ;;  %s5855_s21 = smul.u32 38, %s4133_s16  ;;  %vm366_vm0 = vcmask 1046528   ;;  %vm444_vm1 = vcmask 64512   ;;  %vm1873_vm2 = vcmask 1044480  }
   0xe   : > { %7411 = vst [vmem:[#allocation2_spill] sm:$0xff] %v5848_v0  ;;  %5194 = vmatprep.subr.mxu0 %v5848_v0  ;;  %4958 = vmatprep.subr.mxu1 %v4141_v1  ;;  %v4335_v2 = vld [vmem:[%s7357_s2 + $0x28] sm:$0xff]  ;;  %v324_v3 = vld [vmem:[%s7357_s2] sm:$0xff]  ;;  %v5923_v38 = vld [vmem:[%s7357_s2 + $0x30] sm:$0xff]  ;;  %vm2322_vm3 = vcmask 1043456   ;;  %s6094_s9 = sadd.s32 1, %s4133_s16 }
   0xf   : > { %5195 = vmatpush3.msra.mxu0 %v5848_v0  ;;  %4959 = vmatpush3.msra.mxu1 %v4141_v1  ;;  %p211_p3 = scmp.lt.s32.totalorder %s5855_s21, 341  ;;  %v5928_v39 = vld [vmem:[%s7357_s2 + $0x10] sm:$0xff]  ;;  %s217_s12 = smul.u32 38, %s6094_s9  ;;  %vm1109_vm4 = vcmask 1045504   ;;  %vm3086_vm5 = vcmask 1042432   ;;  %vm3535_vm6 = vcmask 1041408  }
  0x10   : > { %5253 = vmatprep.subr.mxu0 %v4335_v2  ;;  %5017 = vmatprep.subr.mxu1 %v324_v3  ;;  %p225_p5 = scmp.lt.s32.totalorder %s5855_s21, 303 }
  0x11   : > { %s212_s26 = scalar_select %p211_p3, %s5855_s21, 341 }
  0x12   : > { %p6137_p4 = scmp.lt.s32.totalorder %s217_s12, 341  ;;  %s7494_s21 = smov (!%p225_p5, %s5855_s21), 303 }
  0x13   : > { %s4138_s27 = sshll.u32 %s212_s26, 2  ;;  %s4140_s26 = sshll.u32 %s7494_s21, 3 }
  0x14   : > { %s5870_s30 = scalar_lea.vmem %s7355_s0, %s4138_s27  ;;  %s7492_s12 = smov (!%p6137_p4, %s217_s12), 341 }
  0x15   : > { %v4495_v4 = vld [vmem:[%s5870_s30] sm:$0xff]   ;;  %v4587_v5 = vld [vmem:[%s5870_s30 + $0x10] sm:$0xff]   ;;  %v4586_v6 = vld [vmem:[%s5870_s30 + $0x8] sm:$0xff]   ;;  %s4139_s14 = sshll.u32 %s7492_s12, 2  ;;  %s7229_s5 = scalar_lea.vmem %s7359_s4, %s4140_s26 }
  0x16   : > { %v5875_v7 = vunpack.c.l.bf16 %v4495_v4  ;;  %v5877_v8 = vunpack.c.h.bf16 %v4495_v4  ;;  %v5879_v9 = vunpack.c.l.bf16 %v4587_v5  ;;  %v5881_v10 = vunpack.c.h.bf16 %v4587_v5  ;;  %v4588_v11 = vld [vmem:[%s5870_s30 + $0x18] sm:$0xff]   ;;  %v4589_v16 = vld [vmem:[%s5870_s30 + $0x20] sm:$0xff]   ;;  %v4590_v29 = vld [vmem:[%s5870_s30 + $0x28] sm:$0xff]   ;;  %s6213_s18 = scalar_lea.vmem %s7356_s1, %s4139_s14 }
  0x17   : > { %v5884_v12 = vunpack.c.l.bf16 %v4586_v6  ;;  %v5886_v13 = vunpack.c.l.bf16 %v4588_v11  ;;  %v5888_v14 = vunpack.c.h.bf16 %v4586_v6  ;;  %v5890_v15 = vunpack.c.h.bf16 %v4588_v11  ;;  %v4591_v37 = vld [vmem:[%s5870_s30 + $0x30] sm:$0xff]   ;;  %v4592_v50 = vld [vmem:[%s5870_s30 + $0x38] sm:$0xff]   ;;  %v4593_v62 = vld [vmem:[%s5870_s30 + $0x40] sm:$0xff]  }
  0x18   : > { %v367_v17 = vrot.slane %v5875_v7, 1  ;;  %v368_v18 = vrot.slane %v5877_v8, 1  ;;  %v1874_v19 = vrot.slane %v5879_v9, 3  ;;  %v1875_v20 = vrot.slane %v5881_v10, 3 }
  0x19   : > { %7412 = vst [vmem:[#allocation3_spill] sm:$0xff] %v5886_v13  ;;  %7413 = vst [vmem:[#allocation4_spill] sm:$0xff] %v5890_v15  ;;  %v370_v21 = vrot.slane %v5884_v12, 1  ;;  %v1877_v22 = vrot.slane %v5886_v13, 3  ;;  %v372_v23 = vrot.slane %v5888_v14, 1  ;;  %v1879_v24 = vrot.slane %v5890_v15, 3 }
  0x1a   : > { %v369_v25 = vsel %vm366_vm0, %v367_v17, %v368_v18  ;;  %v1876_v26 = vsel %vm1873_vm2, %v1874_v19, %v1875_v20  ;;  %v374_v27 = vrot.slane %v5879_v9, 1  ;;  %v5904_v28 = vunpack.c.l.bf16 %v4589_v16 }
  0x1b   : > { %4960 = vmatprep.mubr.msk.f32.mxu1 %vm444_vm1, %v369_v25  ;;  %5196 = vmatprep.mubr.msk.f32.mxu0 %vm444_vm1, %v1876_v26  ;;  %v371_v30 = vsel %vm366_vm0, %v368_v18, %v370_v21  ;;  %v1878_v31 = vsel %vm1873_vm2, %v1875_v20, %v1877_v22  ;;  %v373_v32 = vsel %vm366_vm0, %v370_v21, %v372_v23  ;;  %v376_v33 = vrot.slane %v5881_v10, 1  ;;  %v4594_v20 = vld [vmem:[%s5870_s30 + $0x48] sm:$0xff]  }
  0x1c   : > { %7414 = vst [vmem:[#allocation5_spill] sm:$0xff] %v5904_v28  ;;  %4961 = vmatmul.mubr.msk.f32.vlgmr.msra.gmra.mrb[0].mxu1 %vm444_vm1, %v371_v30  ;;  %5197 = vmatmul.mubr.msk.f32.vlgmr.msra.gmra.mrb[0].mxu0 %vm444_vm1, %v1878_v31  ;;  %v1880_v34 = vsel %vm1873_vm2, %v1877_v22, %v1879_v24  ;;  %v1881_v35 = vrot.slane %v5904_v28, 3  ;;  %v5917_v36 = vunpack.c.h.bf16 %v4589_v16  ;;  %v375_v40 = vsel %vm366_vm0, %v372_v23, %v374_v27 }
  0x1d   : > { %5254 = vmatpush3.msra.mxu0 %v4335_v2  ;;  %4963 = vmatprep.mubr.msk.f32.mxu1 %vm444_vm1, %v373_v32  ;;  %v377_v41 = vsel %vm366_vm0, %v374_v27, %v376_v33  ;;  %v378_v42 = vrot.slane %v5886_v13, 1  ;;  %v5934_v43 = vunpack.c.l.bf16 %v4590_v29  ;;  %v380_v46 = vrot.slane %v5890_v15, 1  ;;  %v4595_v32 = vld [vmem:[%s5870_s30 + $0x50] sm:$0xff]  }
  0x1e   : > { %7415 = vst [vmem:[#allocation6_spill] sm:$0xff] %v5917_v36  ;;  %5199 = vmatprep.mubr.msk.f32.mxu0 %vm444_vm1, %v1880_v34  ;;  %5018 = vmatpush3.msra.mxu1 %v324_v3  ;;  %v1882_v44 = vsel %vm1873_vm2, %v1879_v24, %v1881_v35  ;;  %v1883_v45 = vrot.slane %v5917_v36, 3  ;;  %v5940_v47 = vunpack.c.h.bf16 %v4590_v29  ;;  %v5943_v49 = vunpack.c.l.bf16 %v4591_v37 }
  0x1f   : > { %7416 = vst [vmem:[#allocation7_spill] sm:$0xff] %v5934_v43  ;;  %v1885_v48 = vrot.slane %v5934_v43, 3  ;;  %5312 = vmatprep.subr.mxu0 %v5923_v38  ;;  %5076 = vmatprep.subr.mxu1 %v5928_v39  ;;  %v382_v53 = vrot.slane %v5904_v28, 1  ;;  %v379_v54 = vsel %vm366_vm0, %v376_v33, %v378_v42  ;;  %v5958_v57 = vunpack.c.h.bf16 %v4591_v37 }
  0x20   : > { %7417 = vst [vmem:[#allocation8_spill] sm:$0xff] %v5940_v47  ;;  %4964 = vmatmul.mubr.msk.f32.gmra.mrb[2].mxu1 %vm444_vm1, %v375_v40  ;;  %5200 = vmatmul.mubr.msk.f32.gmra.mrb[2].mxu0 %vm444_vm1, %v1882_v44  ;;  %v1884_v51 = vsel %vm1873_vm2, %v1881_v35, %v1883_v45  ;;  %v1887_v52 = vrot.slane %v5940_v47, 3  ;;  %v1889_v56 = vrot.slane %v5943_v49, 3  ;;  %v381_v58 = vsel %vm366_vm0, %v378_v42, %v380_v46 }
  0x21   : > { %4966 = vmatprep.mubr.msk.f32.mxu1 %vm444_vm1, %v377_v41  ;;  %5202 = vmatprep.mubr.msk.f32.mxu0 %vm444_vm1, %v1884_v51  ;;  %v1886_v55 = vsel %vm1873_vm2, %v1883_v45, %v1885_v48  ;;  %7418 = vst [vmem:[#allocation9_spill] sm:$0xff] %v5958_v57  ;;  %v384_v60 = vrot.slane %v5917_v36, 1  ;;  %v5963_v61 = vunpack.c.l.bf16 %v4592_v50  ;;  %v1891_v63 = vrot.slane %v5958_v57, 3 }
  0x22   : > { %v1888_v59 = vsel %vm1873_vm2, %v1885_v48, %v1887_v52  ;;  %v5967_v1 = vunpack.c.h.bf16 %v4592_v50  ;;  %v383_v2 = vsel %vm366_vm0, %v380_v46, %v382_v53  ;;  %v386_v3 = vrot.slane %v5934_v43, 1  ;;  %v4596_v48 = vld [vmem:[%s5870_s30 + $0x58] sm:$0xff]  }
  0x23   : > { %7419 = vst [vmem:[#allocation10_spill] sm:$0xff] %v5963_v61  ;;  %v1890_v4 = vsel %vm1873_vm2, %v1887_v52, %v1889_v56  ;;  %v1893_v5 = vrot.slane %v5963_v61, 3  ;;  %v388_v6 = vrot.slane %v5940_v47, 1  ;;  %v5978_v11 = vunpack.c.l.bf16 %v4593_v62 }
  0x24   : > { %7420 = vst [vmem:[#allocation11_spill] sm:$0xff] %v5967_v1  ;;  %4967 = vmatmul.mubr.msk.f32.gmra.mrb[4].mxu1 %vm444_vm1, %v379_v54  ;;  %5203 = vmatmul.mubr.msk.f32.gmra.mrb[4].mxu0 %vm444_vm1, %v1886_v55  ;;  %v385_v16 = vsel %vm366_vm0, %v382_v53, %v384_v60  ;;  %v1892_v17 = vsel %vm1873_vm2, %v1889_v56, %v1891_v63  ;;  %v1895_v18 = vrot.slane %v5967_v1, 3  ;;  %v5983_v19 = vunpack.c.h.bf16 %v4593_v62  ;;  %v4597_v62 = vld [vmem:[%s5870_s30 + $0x60] sm:$0xff]  }
  0x25   : > { %4969 = vmatprep.mubr.msk.f32.mxu1 %vm444_vm1, %v381_v58  ;;  %5205 = vmatprep.mubr.msk.f32.mxu0 %vm444_vm1, %v1888_v59  ;;  %7421 = vst [vmem:[#allocation12_spill] sm:$0xff] %v5978_v11  ;;  %v387_v21 = vsel %vm366_vm0, %v384_v60, %v386_v3  ;;  %v390_v22 = vrot.slane %v5943_v49, 1  ;;  %v1894_v23 = vsel %vm1873_vm2, %v1891_v63, %v1893_v5  ;;  %v1897_v25 = vrot.slane %v5978_v11, 3 }
  0x26   : > { %7422 = vst [vmem:[#allocation13_spill] sm:$0xff] %v5983_v19  ;;  %v389_v24 = vsel %vm366_vm0, %v386_v3, %v388_v6  ;;  %v5995_v26 = vunpack.c.l.bf16 %v4594_v20  ;;  %v1896_v27 = vsel %vm1873_vm2, %v1893_v5, %v1895_v18  ;;  %v392_v29 = vrot.slane %v5958_v57, 1 }
  0x27   : > { %v1899_v30 = vrot.slane %v5983_v19, 3  ;;  %v6000_v31 = vunpack.c.h.bf16 %v4594_v20  ;;  %v391_v33 = vsel %vm366_vm0, %v388_v6, %v390_v22  ;;  %v394_v34 = vrot.slane %v5963_v61, 1 }
  0x28   : > { %4970 = vmatmul.mubr.msk.f32.gmra.mrb[6].mxu1 %vm444_vm1, %v383_v2  ;;  %5206 = vmatmul.mubr.msk.f32.gmra.mrb[6].mxu0 %vm444_vm1, %v1890_v4  ;;  %7423 = vst [vmem:[#allocation14_spill] sm:$0xff] %v5995_v26  ;;  %v1898_v35 = vsel %vm1873_vm2, %v1895_v18, %v1897_v25  ;;  %v1901_v37 = vrot.slane %v5995_v26, 3  ;;  %v396_v40 = vrot.slane %v5967_v1, 1  ;;  %v6012_v41 = vunpack.c.l.bf16 %v4595_v32 }
  0x29   : > { %4972 = vmatprep.mubr.msk.f32.mxu1 %vm444_vm1, %v385_v16  ;;  %5208 = vmatprep.mubr.msk.f32.mxu0 %vm444_vm1, %v1892_v17  ;;  %7424 = vst [vmem:[#allocation15_spill] sm:$0xff] %v6000_v31  ;;  %v393_v42 = vsel %vm366_vm0, %v390_v22, %v392_v29  ;;  %v1900_v44 = vsel %vm1873_vm2, %v1897_v25, %v1899_v30  ;;  %v1903_v45 = vrot.slane %v6000_v31, 3  ;;  %v6017_v46 = vunpack.c.h.bf16 %v4595_v32 }
  0x2a   : > { %7425 = vst [vmem:[#allocation16_spill] sm:$0xff] %v6012_v41  ;;  %v395_v50 = vsel %vm366_vm0, %v392_v29, %v394_v34  ;;  %v398_v51 = vrot.slane %v5978_v11, 1  ;;  %v1902_v52 = vsel %vm1873_vm2, %v1899_v30, %v1901_v37  ;;  %v397_v53 = vsel %vm366_vm0, %v394_v34, %v396_v40 }
  0x2b   : > { %7426 = vst [vmem:[#allocation17_spill] sm:$0xff] %v6017_v46  ;;  %v1905_v54 = vrot.slane %v6012_v41, 3  ;;  %v6029_v55 = vunpack.c.l.bf16 %v4596_v48  ;;  %v1904_v56 = vsel %vm1873_vm2, %v1901_v37, %v1903_v45  ;;  %v400_v58 = vrot.slane %v5983_v19, 1 }
  0x2c   : > { %4973 = vmatmul.mubr.msk.f32.gmra.mrb[8].mxu1 %vm444_vm1, %v387_v21  ;;  %5209 = vmatmul.mubr.msk.f32.gmra.mrb[8].mxu0 %vm444_vm1, %v1894_v23  ;;  %v1907_v59 = vrot.slane %v6017_v46, 3  ;;  %v6034_v60 = vunpack.c.h.bf16 %v4596_v48  ;;  %v399_v63 = vsel %vm366_vm0, %v396_v40, %v398_v51  ;;  %v402_v2 = vrot.slane %v5995_v26, 1 }
  0x2d   : > { %4975 = vmatprep.mubr.msk.f32.mxu1 %vm444_vm1, %v389_v24  ;;  %5211 = vmatprep.mubr.msk.f32.mxu0 %vm444_vm1, %v1896_v27  ;;  %7427 = vst [vmem:[#allocation18_spill] sm:$0xff] %v6029_v55  ;;  %v1906_v3 = vsel %vm1873_vm2, %v1903_v45, %v1905_v54  ;;  %v1909_v4 = vrot.slane %v6029_v55, 3  ;;  %v404_v5 = vrot.slane %v6000_v31, 1  ;;  %v6046_v6 = vunpack.c.l.bf16 %v4597_v62  ;;  %v4598_v45 = vld [vmem:[%s5870_s30 + $0x68] sm:$0xff]  }
  0x2e   : > { %7428 = vst [vmem:[#allocation19_spill] sm:$0xff] %v6034_v60  ;;  %v401_v16 = vsel %vm366_vm0, %v398_v51, %v400_v58  ;;  %v1908_v17 = vsel %vm1873_vm2, %v1905_v54, %v1907_v59  ;;  %v1911_v18 = vrot.slane %v6034_v60, 3  ;;  %v403_v20 = vsel %vm366_vm0, %v400_v58, %v402_v2 }
  0x2f   : > { %v1910_v21 = vsel %vm1873_vm2, %v1907_v59, %v1909_v4  ;;  %v405_v22 = vsel %vm366_vm0, %v402_v2, %v404_v5  ;;  %v406_v23 = vrot.slane %v6012_v41, 1  ;;  %v7360_v24 = vrot.slane %v6046_v6, 3 }
  0x30   : > { %4976 = vmatmul.mubr.msk.f32.gmra.mrb[10].mxu1 %vm444_vm1, %v391_v33  ;;  %5212 = vmatmul.mubr.msk.f32.gmra.mrb[10].mxu0 %vm444_vm1, %v1898_v35  ;;  %v1912_v25 = vsel %vm1873_vm2, %v1909_v4, %v1911_v18  ;;  %v408_v27 = vrot.slane %v6017_v46, 1  ;;  %v2323_v29 = vrot.slane %v5879_v9, 4  ;;  %v2324_v30 = vrot.slane %v5881_v10, 4 }
  0x31   : > { %4978 = vmatprep.mubr.msk.f32.mxu1 %vm444_vm1, %v393_v42  ;;  %5214 = vmatprep.mubr.msk.f32.mxu0 %vm444_vm1, %v1900_v44  ;;  %v410_v32 = vrot.slane %v6029_v55, 1  ;;  %v407_v33 = vsel %vm366_vm0, %v404_v5, %v406_v23  ;;  %v1914_v34 = vsel %vm1873_vm2, %v1911_v18, %v7360_v24  ;;  %v2326_v35 = vrot.slane %v5886_v13, 4 }
  0x32   : > { %v409_v37 = vsel %vm366_vm0, %v406_v23, %v408_v27  ;;  %v2325_v40 = vsel %vm2322_vm3, %v2323_v29, %v2324_v30  ;;  %v412_v42 = vrot.slane %v6034_v60, 1  ;;  %v6077_v44 = vunpack.c.h.bf16 %v4597_v62 }
  0x33   : > { %v2328_v48 = vrot.slane %v5890_v15, 4  ;;  %v414_v51 = vrot.slane %v6046_v6, 1  ;;  %v2332_v54 = vrot.slane %v5917_v36, 4  ;;  %v6098_v62 = vunpack.c.h.bf16 %v4598_v45 }
  0x34   : > { %4979 = vmatmul.mubr.msk.f32.gmra.mrb[12].mxu1 %vm444_vm1, %v395_v50  ;;  %5215 = vmatmul.mubr.msk.f32.gmra.mrb[12].mxu0 %vm444_vm1, %v1902_v52  ;;  %7429 = vst [vmem:[#allocation20_spill] sm:$0xff] %v6077_v44  ;;  %v411_v50 = vsel %vm366_vm0, %v408_v27, %v410_v32  ;;  %v2327_v52 = vsel %vm2322_vm3, %v2324_v30, %v2326_v35  ;;  %v416_v59 = vrot.slane %v6077_v44, 1  ;;  %v2334_v5 = vrot.slane %v5934_v43, 4 }
  0x35   : > { %4981 = vmatprep.mubr.msk.f32.mxu1 %vm444_vm1, %v397_v53  ;;  %5217 = vmatprep.mubr.msk.f32.mxu0 %vm444_vm1, %v1904_v56  ;;  %v2330_v53 = vrot.slane %v5904_v28, 4  ;;  %v6090_v56 = vunpack.c.l.bf16 %v4598_v45  ;;  %v413_v58 = vsel %vm366_vm0, %v410_v32, %v412_v42  ;;  %v2329_v2 = vsel %vm2322_vm3, %v2326_v35, %v2328_v48  ;;  %v4601_v45 = vld [vmem:[%s5870_s30 + $0x80] sm:$0xff]  }
  0x36   : > { %v415_v4 = vsel %vm366_vm0, %v412_v42, %v414_v51  ;;  %v6132_v27 = vsel %vm2322_vm3, %v2332_v54, %v2334_v5  ;;  %v2338_v29 = vrot.slane %v5943_v49, 4 }
  0x37   : > { %v418_v18 = vrot.slane %v6090_v56, 1 }
  0x38   : > { %4982 = vmatmul.mubr.msk.f32.gmra.mrb[14].mxu1 %vm444_vm1, %v399_v63  ;;  %5218 = vmatmul.mubr.msk.f32.gmra.mrb[14].mxu0 %vm444_vm1, %v1906_v3  ;;  %v4599_v63 = vld [vmem:[%s5870_s30 + $0x70] sm:$0xff]   ;;  %v6105_v3 = vld [vmem:[%s7357_s2 + $0x38] sm:$0xff] }
  0x39   : > { %4984 = vmatprep.mubr.msk.f32.mxu1 %vm444_vm1, %v401_v16  ;;  %5220 = vmatprep.mubr.msk.f32.mxu0 %vm444_vm1, %v1908_v17  ;;  %v2331_v16 = vsel %vm2322_vm3, %v2328_v48, %v2330_v53  ;;  %v6116_v17 = vsel %vm2322_vm3, %v2330_v53, %v2332_v54  ;;  %v6125_v23 = vunpack.c.h.bf16 %v4599_v63  ;;  %v419_v30 = vsel %vm366_vm0, %v416_v59, %v418_v18 }
  0x3a   : > { %v6178_v54 = vunpack.c.l.bf16 %v4601_v45 }
  0x3c   : > { %4985 = vmatmul.mubr.msk.f32.gmra.mrb[16].mxu1 %vm444_vm1, %v403_v20  ;;  %5221 = vmatmul.mubr.msk.f32.gmra.mrb[16].mxu0 %vm444_vm1, %v1910_v21  ;;  %v6119_v20 = vunpack.c.l.bf16 %v4599_v63  ;;  %v417_v21 = vsel %vm366_vm0, %v414_v51, %v416_v59  ;;  %v2344_v63 = vrot.slane %v5967_v1, 4 }
  0x3d   : > { %4987 = vmatprep.mubr.msk.f32.mxu1 %vm444_vm1, %v405_v22  ;;  %5223 = vmatprep.mubr.msk.f32.mxu0 %vm444_vm1, %v1912_v25  ;;  %v420_v22 = vrot.slane %v6098_v62, 1  ;;  %v4600_v25 = vld [vmem:[%s5870_s30 + $0x78] sm:$0xff]  }
  0x3e   : > { %v422_v32 = vrot.slane %v6119_v20, 1  ;;  %v6154_v42 = vunpack.c.h.bf16 %v4600_v25 }
  0x3f   : > { %v421_v35 = vsel %vm366_vm0, %v418_v18, %v420_v22 }
  0x40   : > { %4988 = vmatmul.mubr.msk.f32.gmra.mrb[18].mxu1 %vm444_vm1, %v407_v33  ;;  %5224 = vmatmul.mubr.msk.f32.gmra.mrb[18].mxu0 %vm444_vm1, %v1914_v34  ;;  %v2340_v33 = vrot.slane %v5958_v57, 4  ;;  %v6147_v34 = vunpack.c.l.bf16 %v4600_v25  ;;  %v423_v51 = vsel %vm366_vm0, %v420_v22, %v422_v32  ;;  %v428_v59 = vrot.slane %v6154_v42, 1 }
  0x41   : > { %4990 = vmatprep.mubr.msk.f32.mxu1 %vm444_vm1, %v409_v37  ;;  %5255 = vmatprep.mubr.msk.f32.mxu0 %vm444_vm1, %v2325_v40  ;;  %v424_v40 = vrot.slane %v6125_v23, 1  ;;  %v2348_v22 = vrot.slane %v5983_v19, 4 }
  0x42   : > { %v426_v53 = vrot.slane %v6147_v34, 1 }
  0x44   : > { %4991 = vmatmul.mubr.msk.f32.gmra.mrb[20].mxu1 %vm444_vm1, %v411_v50  ;;  %5256 = vmatmul.mubr.msk.f32.vlgmr.msra.gmra.mrb[0].mxu0 %vm444_vm1, %v2327_v52  ;;  %v2342_v50 = vrot.slane %v5963_v61, 4  ;;  %v6175_v52 = vsel %vm2322_vm3, %v2338_v29, %v2340_v33  ;;  %v427_v18 = vsel %vm366_vm0, %v424_v40, %v426_v53  ;;  %v429_v25 = vsel %vm366_vm0, %v426_v53, %v428_v59 }
  0x45   : > { %5313 = vmatpush3.msra.mxu0 %v5923_v38  ;;  %4993 = vmatprep.mubr.msk.f32.mxu1 %vm444_vm1, %v413_v58  ;;  %v2336_v38 = vrot.slane %v5940_v47, 4  ;;  %v425_v58 = vsel %vm366_vm0, %v422_v32, %v424_v40  ;;  %v2350_v40 = vrot.slane %v5995_v26, 4 }
  0x46   : > { %5258 = vmatprep.mubr.msk.f32.mxu0 %vm444_vm1, %v2329_v2  ;;  %5371 = vmatprep.subr.mxu0 %v6105_v3  ;;  %v6183_v2 = vunpack.c.h.bf16 %v4601_v45  ;;  %v4605_v45 = vld [vmem:[%s6213_s18 + $0x10] sm:$0xff]  }
  0x47   : > { %v6151_v37 = vsel %vm2322_vm3, %v2334_v5, %v2336_v38  ;;  %v6161_v48 = vsel %vm2322_vm3, %v2336_v38, %v2338_v29  ;;  %v6190_v5 = vsel %vm2322_vm3, %v2340_v33, %v2342_v50  ;;  %v6204_v29 = vsel %vm2322_vm3, %v2342_v50, %v2344_v63  ;;  %v4603_v33 = vld [vmem:[%s5870_s30 + $0x90] sm:$0xff]  }
  0x48   : > { %4994 = vmatmul.mubr.msk.f32.gmra.mrb[22].mxu1 %vm444_vm1, %v415_v4  ;;  %5259 = vmatmul.mubr.msk.f32.gmra.mrb[2].mxu0 %vm444_vm1, %v2331_v16  ;;  %v4602_v4 = vld [vmem:[%s5870_s30 + $0x88] sm:$0xff]   ;;  %7431 = vst [vmem:[#allocation21_spill] sm:$0xff] %v6190_v5  ;;  %v2346_v16 = vrot.slane %v5978_v11, 4  ;;  %7432 = vst [vmem:[#allocation22_spill] sm:$0xff] %v6204_v29  ;;  %v6236_v24 = vunpack.c.h.bf16 %v4603_v33  ;;  %v6241_v0 = vunpack.c.l.bf16 %v4605_v45 }
  0x49   : > { %4996 = vmatprep.mubr.msk.f32.mxu1 %vm444_vm1, %v417_v21  ;;  %5261 = vmatprep.mubr.msk.f32.mxu0 %vm444_vm1, %v6116_v17  ;;  %v430_v21 = vrot.slane %v6178_v54, 1  ;;  %v6200_v38 = vunpack.c.l.bf16 %v4602_v4  ;;  %v6207_v32 = vunpack.c.h.bf16 %v4602_v4 }
  0x4b   : > { %v431_v50 = vsel %vm366_vm0, %v428_v59, %v430_v21  ;;  %v434_v53 = vrot.slane %v6200_v38, 1  ;;  %v436_v4 = vrot.slane %v6207_v32, 1  ;;  %v6247_v59 = vsel %vm2322_vm3, %v2348_v22, %v2350_v40 }
  0x4c   : > { %4997 = vmatmul.mubr.msk.f32.gmra.mrb[24].mxu1 %vm444_vm1, %v419_v30  ;;  %5262 = vmatmul.mubr.msk.f32.gmra.mrb[4].mxu0 %vm444_vm1, %v6132_v27  ;;  %v432_v30 = vrot.slane %v6183_v2, 1  ;;  %7435 = vst [vmem:[#allocation25_spill] sm:$0xff] %v6247_v59 }
  0x4d   : > { %4999 = vmatprep.mubr.msk.f32.mxu1 %vm444_vm1, %v421_v35  ;;  %5264 = vmatprep.mubr.msk.f32.mxu0 %vm444_vm1, %v6151_v37  ;;  %v6219_v35 = vsel %vm2322_vm3, %v2344_v63, %v2346_v16 }
  0x4e   : > { %7433 = vst [vmem:[#allocation23_spill] sm:$0xff] %v6219_v35  ;;  %v433_v63 = vsel %vm366_vm0, %v430_v21, %v432_v30  ;;  %v435_v21 = vsel %vm366_vm0, %v432_v30, %v434_v53 }
  0x50   : > { %5000 = vmatmul.mubr.msk.f32.gmra.mrb[26].mxu1 %vm444_vm1, %v423_v51  ;;  %5265 = vmatmul.mubr.msk.f32.gmra.mrb[6].mxu0 %vm444_vm1, %v6161_v48  ;;  %v6228_v51 = vsel %vm2322_vm3, %v2346_v16, %v2348_v22  ;;  %v2354_v16 = vrot.slane %v6012_v41, 4 }
  0x51   : > { %5002 = vmatprep.mubr.msk.f32.mxu1 %vm444_vm1, %v425_v58  ;;  %5267 = vmatprep.mubr.msk.f32.mxu0 %vm444_vm1, %v6175_v52  ;;  %7434 = vst [vmem:[#allocation24_spill] sm:$0xff] %v6228_v51  ;;  %v6231_v58 = vunpack.c.l.bf16 %v4603_v33 }
  0x53   : > { %v438_v33 = vrot.slane %v6231_v58, 1 }
  0x54   : > { %5003 = vmatmul.mubr.msk.f32.gmra.mrb[28].mxu1 %vm444_vm1, %v427_v18  ;;  %5268 = vmatmul.mubr.msk.f32.gmra.mrb[8].mxu0 %vm444_vm1, %v6190_v5  ;;  %v2352_v18 = vrot.slane %v6000_v31, 4  ;;  %v440_v5 = vrot.slane %v6236_v24, 1 }
  0x55   : > { %5005 = vmatprep.mubr.msk.f32.mxu1 %vm444_vm1, %v429_v25  ;;  %5270 = vmatprep.mubr.msk.f32.mxu0 %vm444_vm1, %v6204_v29  ;;  %v6239_v25 = vld [vmem:[%s6213_s18] sm:$0xff]  }
  0x56   : > { %v6256_v29 = vunpack.c.l.bf16 %v6239_v25  ;;  %v6262_v22 = vsel %vm2322_vm3, %v2350_v40, %v2352_v18  ;;  %v439_v40 = vsel %vm366_vm0, %v436_v4, %v438_v33 }
  0x57   : > { %7437 = vst [vmem:[#allocation27_spill] sm:$0xff] %v6262_v22 }
  0x58   : > { %5006 = vmatmul.mubr.msk.f32.gmra.mrb[30].mxu1 %vm444_vm1, %v431_v50  ;;  %5271 = vmatmul.mubr.msk.f32.gmra.mrb[10].mxu0 %vm444_vm1, %v6219_v35  ;;  %v6258_v50 = vunpack.c.h.bf16 %v4605_v45  ;;  %v437_v35 = vsel %vm366_vm0, %v434_v53, %v436_v4  ;;  %v6272_v45 = vsel %vm2322_vm3, %v2352_v18, %v2354_v16  ;;  %v442_v53 = vrot.slane %v6256_v29, 1 }
  0x59   : > { %5008 = vmatprep.mubr.msk.f32.mxu1 %vm444_vm1, %v433_v63  ;;  %5273 = vmatprep.mubr.msk.f32.mxu0 %vm444_vm1, %v6228_v51  ;;  %v2356_v63 = vrot.slane %v6017_v46, 4  ;;  %v2358_v51 = vrot.slane %v6029_v55, 4  ;;  %v441_v18 = vsel %vm366_vm0, %v438_v33, %v440_v5 }
  0x5a   : > { %7436 = vst [vmem:[#allocation26_spill] sm:$0xff] %v6258_v50  ;;  %v7368_v30 = vrot.slane %v6258_v50, 4  ;;  %v443_v4 = vsel %vm366_vm0, %v440_v5, %v442_v53  ;;  %v2368_v53 = vrot.slane %v6098_v62, 4  ;;  %v2376_v50 = vrot.slane %v6154_v42, 4 }
  0x5c   : > { %5009 = vmatmul.mubr.msk.f32.gmra.mrb[32].mxu1 %vm444_vm1, %v435_v21  ;;  %5274 = vmatmul.mubr.msk.f32.gmra.mrb[12].mxu0 %vm444_vm1, %v6247_v59  ;;  %v7438_v21 = vrot.slane %v6241_v0, 4 }
  0x5d   : > { %5011 = vmatprep.mubr.msk.f32.mxu1 %vm444_vm1, %v437_v35  ;;  %5276 = vmatprep.mubr.msk.f32.mxu0 %vm444_vm1, %v6262_v22  ;;  %v6289_v35 = vsel %vm2322_vm3, %v2354_v16, %v2356_v63  ;;  %v2360_v22 = vrot.slane %v6034_v60, 4  ;;  %v2362_v16 = vrot.slane %v6046_v6, 4 }
  0x5e   : > { %v6285_v59 = vsel %vm2322_vm3, %v7438_v21, %v7368_v30  ;;  %v6300_v21 = vsel %vm2322_vm3, %v2356_v63, %v2358_v51  ;;  %v2366_v63 = vrot.slane %v6090_v56, 4  ;;  %v2372_v30 = vrot.slane %v6125_v23, 4 }
  0x5f   : > { %7439 = vst [vmem:[#allocation28_spill] sm:$0xff] %v6285_v59  ;;  %v6304_v33 = vsel %vm2322_vm3, %v2358_v51, %v2360_v22  ;;  %v6315_v5 = vsel %vm2322_vm3, %v2360_v22, %v2362_v16 }
  0x60   : > { %5012 = vmatmul.mubr.msk.f32.gmra.mrb[34].mxu1 %vm444_vm1, %v439_v40  ;;  %5277 = vmatmul.mubr.msk.f32.gmra.mrb[14].mxu0 %vm444_vm1, %v6272_v45  ;;  %v2364_v40 = vrot.slane %v6077_v44, 4 }
  0x61   : > { %5014 = vmatprep.mubr.msk.f32.mxu1 %vm444_vm1, %v441_v18  ;;  %5279 = vmatprep.mubr.msk.f32.mxu0 %vm444_vm1, %v6289_v35  ;;  %v6329_v18 = vld [vmem:[%s7357_s2 + $0x18] sm:$0xff] }
  0x62   : > { %v6319_v51 = vsel %vm2322_vm3, %v2362_v16, %v2364_v40  ;;  %7440 = vst [vmem:[#allocation29_spill] sm:$0xff] %v6329_v18  ;;  %v6336_v22 = vsel %vm2322_vm3, %v2364_v40, %v2366_v63  ;;  %v6341_v16 = vsel %vm2322_vm3, %v2366_v63, %v2368_v53  ;;  %v2374_v40 = vrot.slane %v6147_v34, 4 }
  0x64   : > { %5015 = vmatmul.mubr.msk.f32.gmra.mrb[36].mxu1 %vm444_vm1, %v443_v4  ;;  %5280 = vmatmul.mubr.msk.f32.gmra.mrb[16].mxu0 %vm444_vm1, %v6300_v21  ;;  %v2370_v4 = vrot.slane %v6119_v20, 4  ;;  %v6374_v59 = vsel %vm2322_vm3, %v2374_v40, %v2376_v50 }
  0x65   : > { %5019 = vmatprep.mubr.msk.f32.mxu1 %vm444_vm1, %v5875_v7  ;;  %5282 = vmatprep.mubr.msk.f32.mxu0 %vm444_vm1, %v6304_v33  ;;  %7441 = vst [vmem:[#allocation30_spill] sm:$0xff] %v6374_v59 }
  0x66   : > { %v6358_v63 = vsel %vm2322_vm3, %v2370_v4, %v2372_v30 }
  0x68   : > { %5020 = vmatmul.mubr.msk.f32.vlgmr.msra.gmra.mrb[0].mxu1 %vm444_vm1, %v5877_v8  ;;  %5283 = vmatmul.mubr.msk.f32.gmra.mrb[18].mxu0 %vm444_vm1, %v6315_v5 }
  0x69   : > { %5022 = vmatprep.mubr.msk.f32.mxu1 %vm444_vm1, %v5884_v12  ;;  %5285 = vmatprep.mubr.msk.f32.mxu0 %vm444_vm1, %v6319_v51 }
  0x6a   : > { %5077 = vmatpush3.msra.mxu1 %v5928_v39  ;;  %v6354_v39 = vsel %vm2322_vm3, %v2368_v53, %v2370_v4  ;;  %v6370_v53 = vsel %vm2322_vm3, %v2372_v30, %v2374_v40  ;;  %v2378_v4 = vrot.slane %v6178_v54, 4  ;;  %v2382_v40 = vrot.slane %v6200_v38, 4 }
  0x6b   : > { %5135 = vmatprep.subr.mxu1 %v6329_v18  ;;  %v2380_v18 = vrot.slane %v6183_v2, 4 }
  0x6c   : > { %5023 = vmatmul.mubr.msk.f32.gmra.mrb[2].mxu1 %vm444_vm1, %v5888_v14  ;;  %5286 = vmatmul.mubr.msk.f32.gmra.mrb[20].mxu0 %vm444_vm1, %v6336_v22  ;;  %v6386_v30 = vsel %vm2322_vm3, %v2376_v50, %v2378_v4 }
  0x6d   : > { %5025 = vmatprep.mubr.msk.f32.mxu1 %vm444_vm1, %v5879_v9  ;;  %5288 = vmatprep.mubr.msk.f32.mxu0 %vm444_vm1, %v6341_v16  ;;  %7442 = vst [vmem:[#allocation31_spill] sm:$0xff] %v6386_v30  ;;  %v6402_v50 = vsel %vm2322_vm3, %v2380_v18, %v2382_v40 }
  0x70   : > { %5026 = vmatmul.mubr.msk.f32.gmra.mrb[4].mxu1 %vm444_vm1, %v5881_v10  ;;  %5289 = vmatmul.mubr.msk.f32.gmra.mrb[22].mxu0 %vm444_vm1, %v6354_v39 }
  0x71   : > { %5028 = vmatprep.mubr.msk.f32.mxu1 %vm444_vm1, %v5886_v13  ;;  %5291 = vmatprep.mubr.msk.f32.mxu0 %vm444_vm1, %v6358_v63  ;;  %v6390_v13 = vsel %vm2322_vm3, %v2378_v4, %v2380_v18  ;;  %v2386_v4 = vrot.slane %v6231_v58, 4 }
  0x72   : > { %7443 = vst [vmem:[#allocation32_spill] sm:$0xff] %v6390_v13 }
  0x74   : > { %5029 = vmatmul.mubr.msk.f32.gmra.mrb[6].mxu1 %vm444_vm1, %v5890_v15  ;;  %5292 = vmatmul.mubr.msk.f32.gmra.mrb[24].mxu0 %vm444_vm1, %v6370_v53  ;;  %v2384_v15 = vrot.slane %v6207_v32, 4 }
  0x75   : > { %5031 = vmatprep.mubr.msk.f32.mxu1 %vm444_vm1, %v5904_v28  ;;  %5294 = vmatprep.mubr.msk.f32.mxu0 %vm444_vm1, %v6374_v59  ;;  %v2388_v59 = vrot.slane %v6236_v24, 4 }
  0x76   : > { %v6406_v28 = vsel %vm2322_vm3, %v2382_v40, %v2384_v15  ;;  %v6422_v18 = vsel %vm2322_vm3, %v2384_v15, %v2386_v4  ;;  %v2390_v40 = vrot.slane %v6256_v29, 4 }
  0x78   : > { %5032 = vmatmul.mubr.msk.f32.gmra.mrb[8].mxu1 %vm444_vm1, %v5917_v36  ;;  %5295 = vmatmul.mubr.msk.f32.gmra.mrb[26].mxu0 %vm444_vm1, %v6386_v30  ;;  %v6410_v36 = vunpack.c.h.bf16 %v6239_v25  ;;  %v4604_v30 = vld [vmem:[%s6213_s18 + $0x8] sm:$0xff]   ;;  %v6442_v15 = vsel %vm2322_vm3, %v2388_v59, %v2390_v40 }
  0x79   : > { %5034 = vmatprep.mubr.msk.f32.mxu1 %vm444_vm1, %v5934_v43  ;;  %5297 = vmatprep.mubr.msk.f32.mxu0 %vm444_vm1, %v6390_v13  ;;  %v6425_v25 = vunpack.c.l.bf16 %v4604_v30  ;;  %v6428_v43 = vsel %vm2322_vm3, %v2386_v4, %v2388_v59  ;;  %v6431_v13 = vunpack.c.h.bf16 %v4604_v30 }
  0x7a   : > { %7444 = vst [vmem:[#allocation33_spill] sm:$0xff] %v6410_v36 }
  0x7b   : > { %7445 = vst [vmem:[#allocation34_spill] sm:$0xff] %v6431_v13  ;;  %v2394_v4 = vrot.slane %v6425_v25, 4 }
  0x7c   : > { %5035 = vmatmul.mubr.msk.f32.gmra.mrb[10].mxu1 %vm444_vm1, %v5940_v47  ;;  %5298 = vmatmul.mubr.msk.f32.gmra.mrb[28].mxu0 %vm444_vm1, %v6402_v50  ;;  %v2392_v47 = vrot.slane %v6410_v36, 4  ;;  %v2396_v36 = vrot.slane %v6431_v13, 4  ;;  %v7446_v13 = vrot.slane %v6241_v0, 4 }
  0x7d   : > { %5037 = vmatprep.mubr.msk.f32.mxu1 %vm444_vm1, %v5943_v49  ;;  %5300 = vmatprep.mubr.msk.f32.mxu0 %vm444_vm1, %v6406_v28 }
  0x7e   : > { %v6446_v30 = vsel %vm2322_vm3, %v2390_v40, %v2392_v47  ;;  %v6458_v59 = vsel %vm2322_vm3, %v2392_v47, %v2394_v4  ;;  %v6461_v40 = vsel %vm2322_vm3, %v2394_v4, %v2396_v36  ;;  %v6474_v47 = vsel %vm2322_vm3, %v2396_v36, %v7446_v13  ;;  %v6487_v4 = vld [vmem:[%s7357_s2 + $0x40] sm:$0xff]  ;;  %v7447_v13 = vld [vmem:[#allocation21_spill] sm:$0xff] }
  0x7f   : > { %v7448_v36 = vld [vmem:[#allocation22_spill] sm:$0xff] }
  0x80   : > { %5038 = vmatmul.mubr.msk.f32.gmra.mrb[12].mxu1 %vm444_vm1, %v5958_v57  ;;  %5301 = vmatmul.mubr.msk.f32.gmra.mrb[30].mxu0 %vm444_vm1, %v6422_v18 }
  0x81   : > { %5040 = vmatprep.mubr.msk.f32.mxu1 %vm444_vm1, %v5963_v61  ;;  %5303 = vmatprep.mubr.msk.f32.mxu0 %vm444_vm1, %v6428_v43 }
  0x84   : > { %5041 = vmatmul.mubr.msk.f32.gmra.mrb[14].mxu1 %vm444_vm1, %v5967_v1  ;;  %5304 = vmatmul.mubr.msk.f32.gmra.mrb[32].mxu0 %vm444_vm1, %v6442_v15 }
  0x85   : > { %5043 = vmatprep.mubr.msk.f32.mxu1 %vm444_vm1, %v5978_v11  ;;  %5306 = vmatprep.mubr.msk.f32.mxu0 %vm444_vm1, %v6446_v30 }
  0x88   : > { %5044 = vmatmul.mubr.msk.f32.gmra.mrb[16].mxu1 %vm444_vm1, %v5983_v19  ;;  %5307 = vmatmul.mubr.msk.f32.gmra.mrb[34].mxu0 %vm444_vm1, %v6458_v59 }
  0x89   : > { %5046 = vmatprep.mubr.msk.f32.mxu1 %vm444_vm1, %v5995_v26  ;;  %5309 = vmatprep.mubr.msk.f32.mxu0 %vm444_vm1, %v6461_v40 }
  0x8c   : > { %5047 = vmatmul.mubr.msk.f32.gmra.mrb[18].mxu1 %vm444_vm1, %v6000_v31  ;;  %5310 = vmatmul.mubr.msk.f32.gmra.mrb[36].mxu0 %vm444_vm1, %v6474_v47 }
  0x8d   : > { %5049 = vmatprep.mubr.msk.f32.mxu1 %vm444_vm1, %v6012_v41  ;;  %5314 = vmatprep.mubr.msk.f32.mxu0 %vm444_vm1, %v6116_v17  ;;  %v7450_v17 = vld [vmem:[#allocation24_spill] sm:$0xff] }
  0x90   : > { %5050 = vmatmul.mubr.msk.f32.gmra.mrb[20].mxu1 %vm444_vm1, %v6017_v46  ;;  %5315 = vmatmul.mubr.msk.f32.vlgmr.msra.gmra.mrb[0].mxu0 %vm444_vm1, %v6132_v27  ;;  %v7451_v27 = vld [vmem:[#allocation25_spill] sm:$0xff] }
  0x91   : > { %5372 = vmatpush3.msra.mxu0 %v6105_v3  ;;  %5052 = vmatprep.mubr.msk.f32.mxu1 %vm444_vm1, %v6029_v55  ;;  %v7449_v3 = vld [vmem:[#allocation23_spill] sm:$0xff] }
  0x92   : > { %5317 = vmatprep.mubr.msk.f32.mxu0 %vm444_vm1, %v6151_v37  ;;  %5430 = vmatprep.subr.mxu0 %v6487_v4  ;;  %v7452_v37 = vld [vmem:[#allocation27_spill] sm:$0xff] }
  0x94   : > { %5053 = vmatmul.mubr.msk.f32.gmra.mrb[22].mxu1 %vm444_vm1, %v6034_v60  ;;  %5318 = vmatmul.mubr.msk.f32.gmra.mrb[2].mxu0 %vm444_vm1, %v6161_v48  ;;  %v1110_v48 = vrot.slane %v5875_v7, 2  ;;  %v1115_v7 = vrot.slane %v5888_v14, 2 }
  0x95   : > { %5055 = vmatprep.mubr.msk.f32.mxu1 %vm444_vm1, %v6046_v6  ;;  %5320 = vmatprep.mubr.msk.f32.mxu0 %vm444_vm1, %v6175_v52  ;;  %v1111_v52 = vrot.slane %v5877_v8, 2 }
  0x98   : > { %5056 = vmatmul.mubr.msk.f32.gmra.mrb[24].mxu1 %vm444_vm1, %v6077_v44  ;;  %5321 = vmatmul.mubr.msk.f32.gmra.mrb[4].mxu0 %vm444_vm1, %v7447_v13  ;;  %v7456_v13 = vld [vmem:[#allocation2_spill] sm:$0xff] }
  0x99   : > { %5058 = vmatprep.mubr.msk.f32.mxu1 %vm444_vm1, %v6090_v56  ;;  %5323 = vmatprep.mubr.msk.f32.mxu0 %vm444_vm1, %v7448_v36  ;;  %v7458_v36 = vld [vmem:[#allocation5_spill] sm:$0xff] }
  0x9c   : > { %5059 = vmatmul.mubr.msk.f32.gmra.mrb[26].mxu1 %vm444_vm1, %v6098_v62  ;;  %5324 = vmatmul.mubr.msk.f32.gmra.mrb[6].mxu0 %vm444_vm1, %v7449_v3  ;;  %v1125_v3 = vrot.slane %v7458_v36, 2 }
  0x9d   : > { %5061 = vmatprep.mubr.msk.f32.mxu1 %vm444_vm1, %v6119_v20  ;;  %5326 = vmatprep.mubr.msk.f32.mxu0 %vm444_vm1, %v7450_v17 }
  0xa0   : > { %5062 = vmatmul.mubr.msk.f32.gmra.mrb[28].mxu1 %vm444_vm1, %v6125_v23  ;;  %5327 = vmatmul.mubr.msk.f32.gmra.mrb[8].mxu0 %vm444_vm1, %v7451_v27  ;;  %v7459_v27 = vld [vmem:[#allocation6_spill] sm:$0xff] }
  0xa1   : > { %5064 = vmatprep.mubr.msk.f32.mxu1 %vm444_vm1, %v6147_v34  ;;  %5329 = vmatprep.mubr.msk.f32.mxu0 %vm444_vm1, %v7452_v37  ;;  %v1127_v37 = vrot.slane %v7459_v27, 2 }
  0xa4   : > { %5065 = vmatmul.mubr.msk.f32.gmra.mrb[30].mxu1 %vm444_vm1, %v6154_v42  ;;  %5330 = vmatmul.mubr.msk.f32.gmra.mrb[10].mxu0 %vm444_vm1, %v6272_v45  ;;  %v1113_v45 = vrot.slane %v5884_v12, 2 }
  0xa5   : > { %5067 = vmatprep.mubr.msk.f32.mxu1 %vm444_vm1, %v6178_v54  ;;  %5332 = vmatprep.mubr.msk.f32.mxu0 %vm444_vm1, %v6289_v35  ;;  %v1112_v35 = vsel %vm1109_vm4, %v1110_v48, %v1111_v52  ;;  %v7461_v48 = vld [vmem:[#allocation32_spill] sm:$0xff] }
  0xa6   : > { %v1114_v8 = vsel %vm1109_vm4, %v1111_v52, %v1113_v45  ;;  %v1116_v12 = vsel %vm1109_vm4, %v1113_v45, %v1115_v7  ;;  %v7462_v45 = vld [vmem:[#allocation7_spill] sm:$0xff] }
  0xa8   : > { %5068 = vmatmul.mubr.msk.f32.gmra.mrb[32].mxu1 %vm444_vm1, %v6183_v2  ;;  %5333 = vmatmul.mubr.msk.f32.gmra.mrb[12].mxu0 %vm444_vm1, %v6300_v21  ;;  %v1117_v21 = vrot.slane %v5879_v9, 2 }
  0xa9   : > { %5070 = vmatprep.mubr.msk.f32.mxu1 %vm444_vm1, %v6200_v38  ;;  %5335 = vmatprep.mubr.msk.f32.mxu0 %vm444_vm1, %v6304_v33  ;;  %v1119_v33 = vrot.slane %v5881_v10, 2  ;;  %v7455_v10 = vld [vmem:[#allocation4_spill] sm:$0xff] }
  0xaa   : > { %v1118_v14 = vsel %vm1109_vm4, %v1115_v7, %v1117_v21  ;;  %v6613_v7 = vsel %vm1109_vm4, %v1125_v3, %v1127_v37 }
  0xab   : > { %v6581_v9 = vsel %vm1109_vm4, %v1117_v21, %v1119_v33 }
  0xac   : > { %5071 = vmatmul.mubr.msk.f32.gmra.mrb[34].mxu1 %vm444_vm1, %v6207_v32  ;;  %5336 = vmatmul.mubr.msk.f32.gmra.mrb[14].mxu0 %vm444_vm1, %v6315_v5  ;;  %v7453_v5 = vld [vmem:[#allocation3_spill] sm:$0xff] }
  0xad   : > { %5073 = vmatprep.mubr.msk.f32.mxu1 %vm444_vm1, %v6231_v58  ;;  %5338 = vmatprep.mubr.msk.f32.mxu0 %vm444_vm1, %v6319_v51  ;;  %v1121_v51 = vrot.slane %v7453_v5, 2  ;;  %v1135_v5 = vrot.slane %v5958_v57, 2 }
  0xb0   : > { %5074 = vmatmul.mubr.msk.f32.gmra.mrb[36].mxu1 %vm444_vm1, %v6236_v24  ;;  %5339 = vmatmul.mubr.msk.f32.gmra.mrb[16].mxu0 %vm444_vm1, %v6336_v22  ;;  %v7454_v22 = vld [vmem:[#allocation29_spill] sm:$0xff] }
  0xb1   : > { %5078 = vmatprep.mubr.msk.f32.mxu1 %vm444_vm1, %v1112_v35  ;;  %5341 = vmatprep.mubr.msk.f32.mxu0 %vm444_vm1, %v6341_v16  ;;  %v1123_v16 = vrot.slane %v7455_v10, 2  ;;  %v1129_v35 = vrot.slane %v7462_v45, 2  ;;  %v4606_v10 = vld [vmem:[%s6213_s18 + $0x18] sm:$0xff]  }
  0xb3   : > { %v6597_v17 = vsel %vm1109_vm4, %v1121_v51, %v1123_v16  ;;  %v6609_v52 = vsel %vm1109_vm4, %v1123_v16, %v1125_v3  ;;  %v6661_v16 = vunpack.c.l.bf16 %v4606_v10  ;;  %v6667_v3 = vunpack.c.h.bf16 %v4606_v10 }
  0xb4   : > { %5079 = vmatmul.mubr.msk.f32.vlgmr.msra.gmra.mrb[0].mxu1 %vm444_vm1, %v1114_v8  ;;  %5342 = vmatmul.mubr.msk.f32.gmra.mrb[18].mxu0 %vm444_vm1, %v6354_v39  ;;  %v7457_v39 = vld [vmem:[#allocation30_spill] sm:$0xff]  ;;  %v7463_v8 = vld [vmem:[#allocation8_spill] sm:$0xff] }
  0xb5   : > { %5081 = vmatprep.mubr.msk.f32.mxu1 %vm444_vm1, %v1116_v12  ;;  %5344 = vmatprep.mubr.msk.f32.mxu0 %vm444_vm1, %v6358_v63  ;;  %v6593_v63 = vsel %vm1109_vm4, %v1119_v33, %v1121_v51  ;;  %v1131_v21 = vrot.slane %v7463_v8, 2  ;;  %v6625_v12 = vsel %vm1109_vm4, %v1127_v37, %v1129_v35  ;;  %v1133_v33 = vrot.slane %v5943_v49, 2  ;;  %7464 = vst [vmem:[#allocation21_spill] sm:$0xff] %v6661_v16 }
  0xb6   : > { %5136 = vmatpush3.msra.mxu1 %v7454_v22  ;;  %v1139_v22 = vrot.slane %v5967_v1, 2  ;;  %7465 = vst [vmem:[#allocation22_spill] sm:$0xff] %v6667_v3 }
  0xb7   : > { %5489 = vmatprep.subr.mxu1 %v7456_v13  ;;  %v6645_v51 = vsel %vm1109_vm4, %v1133_v33, %v1135_v5 }
  0xb8   : > { %5082 = vmatmul.mubr.msk.f32.gmra.mrb[2].mxu1 %vm444_vm1, %v1118_v14  ;;  %5345 = vmatmul.mubr.msk.f32.gmra.mrb[20].mxu0 %vm444_vm1, %v6370_v53  ;;  %v7460_v53 = vld [vmem:[#allocation31_spill] sm:$0xff]  ;;  %v6629_v14 = vsel %vm1109_vm4, %v1129_v35, %v1131_v21 }
  0xb9   : > { %5084 = vmatprep.mubr.msk.f32.mxu1 %vm444_vm1, %v6581_v9  ;;  %5347 = vmatprep.mubr.msk.f32.mxu0 %vm444_vm1, %v7457_v39  ;;  %v1143_v39 = vrot.slane %v5983_v19, 2 }
  0xbc   : > { %5085 = vmatmul.mubr.msk.f32.gmra.mrb[4].mxu1 %vm444_vm1, %v6593_v63  ;;  %5348 = vmatmul.mubr.msk.f32.gmra.mrb[22].mxu0 %vm444_vm1, %v7460_v53  ;;  %v2777_v53 = vrot.slane %v6661_v16, 4  ;;  %v3088_v16 = vrot.slane %v7459_v27, 5 }
  0xbd   : > { %5087 = vmatprep.mubr.msk.f32.mxu1 %vm444_vm1, %v6597_v17  ;;  %5350 = vmatprep.mubr.msk.f32.mxu0 %vm444_vm1, %v7461_v48  ;;  %v1147_v48 = vrot.slane %v6000_v31, 2 }
  0xc0   : > { %5088 = vmatmul.mubr.msk.f32.gmra.mrb[6].mxu1 %vm444_vm1, %v6609_v52  ;;  %5351 = vmatmul.mubr.msk.f32.gmra.mrb[24].mxu0 %vm444_vm1, %v6402_v50  ;;  %v1137_v50 = vrot.slane %v5963_v61, 2 }
  0xc1   : > { %5090 = vmatprep.mubr.msk.f32.mxu1 %vm444_vm1, %v6613_v7  ;;  %5353 = vmatprep.mubr.msk.f32.mxu0 %vm444_vm1, %v6406_v28  ;;  %v6641_v28 = vsel %vm1109_vm4, %v1131_v21, %v1133_v33  ;;  %v7467_v33 = vld [vmem:[#allocation28_spill] sm:$0xff] }
  0xc2   : > { %v6664_v13 = vsel %vm1109_vm4, %v1137_v50, %v1139_v22 }
  0xc4   : > { %5091 = vmatmul.mubr.msk.f32.gmra.mrb[8].mxu1 %vm444_vm1, %v6625_v12  ;;  %5354 = vmatmul.mubr.msk.f32.gmra.mrb[26].mxu0 %vm444_vm1, %v6422_v18  ;;  %v1141_v18 = vrot.slane %v5978_v11, 2 }
  0xc5   : > { %5093 = vmatprep.mubr.msk.f32.mxu1 %vm444_vm1, %v6629_v14  ;;  %5356 = vmatprep.mubr.msk.f32.mxu0 %vm444_vm1, %v6428_v43  ;;  %v6658_v43 = vsel %vm1109_vm4, %v1135_v5, %v1137_v50  ;;  %v7468_v5 = vld [vmem:[#allocation26_spill] sm:$0xff] }
  0xc6   : > { %v6680_v37 = vsel %vm1109_vm4, %v1139_v22, %v1141_v18  ;;  %v6687_v21 = vsel %vm1109_vm4, %v1141_v18, %v1143_v39  ;;  %v7469_v50 = vrot.slane %v7468_v5, 4  ;;  %v1149_v18 = vrot.slane %v6012_v41, 2 }
  0xc8   : > { %5094 = vmatmul.mubr.msk.f32.gmra.mrb[10].mxu1 %vm444_vm1, %v6641_v28  ;;  %5357 = vmatmul.mubr.msk.f32.gmra.mrb[28].mxu0 %vm444_vm1, %v6442_v15  ;;  %v314_v15 = vld [vmem:[%s6213_s18 + $0x20] sm:$0xf]  ;;  %v2778_v22 = vsel %vm2322_vm3, %v7469_v50, %v2777_v53  ;;  %v3090_v50 = vrot.slane %v7462_v45, 5 }
  0xc9   : > { %5096 = vmatprep.mubr.msk.f32.mxu1 %vm444_vm1, %v6645_v51  ;;  %5359 = vmatprep.mubr.msk.f32.mxu0 %vm444_vm1, %v6446_v30  ;;  %v1145_v30 = vrot.slane %v5995_v26, 2  ;;  %v6684_v35 = vunpack.c.l.bf16 %v314_v15  ;;  %v1151_v15 = vrot.slane %v6017_v46, 2 }
  0xcb   : > { %7466 = vst [vmem:[#allocation23_spill] sm:$0xff] %v6684_v35  ;;  %v6705_v10 = vsel %vm1109_vm4, %v1145_v30, %v1147_v48  ;;  %v6726_v27 = vsel %vm1109_vm4, %v1149_v18, %v1151_v15 }
  0xcc   : > { %5097 = vmatmul.mubr.msk.f32.gmra.mrb[12].mxu1 %vm444_vm1, %v6658_v43  ;;  %5360 = vmatmul.mubr.msk.f32.gmra.mrb[30].mxu0 %vm444_vm1, %v6458_v59  ;;  %v2779_v59 = vrot.slane %v6667_v3, 4  ;;  %v3087_v3 = vrot.slane %v7458_v36, 5 }
  0xcd   : > { %5099 = vmatprep.mubr.msk.f32.mxu1 %vm444_vm1, %v6664_v13  ;;  %5362 = vmatprep.mubr.msk.f32.mxu0 %vm444_vm1, %v6461_v40  ;;  %v6695_v40 = vsel %vm1109_vm4, %v1143_v39, %v1145_v30  ;;  %v6720_v30 = vsel %vm1109_vm4, %v1147_v48, %v1149_v18  ;;  %v3094_v18 = vrot.slane %v5943_v49, 5 }
  0xce   : > { %v2780_v39 = vsel %vm2322_vm3, %v2777_v53, %v2779_v59  ;;  %v3089_v36 = vsel %vm3086_vm5, %v3087_v3, %v3088_v16  ;;  %v1157_v3 = vrot.slane %v6046_v6, 2 }
  0xd0   : > { %5100 = vmatmul.mubr.msk.f32.gmra.mrb[14].mxu1 %vm444_vm1, %v6680_v37  ;;  %5363 = vmatmul.mubr.msk.f32.gmra.mrb[32].mxu0 %vm444_vm1, %v6474_v47  ;;  %v2781_v47 = vrot.slane %v6684_v35, 4  ;;  %v3092_v35 = vrot.slane %v7463_v8, 5 }
  0xd1   : > { %5102 = vmatprep.mubr.msk.f32.mxu1 %vm444_vm1, %v6687_v21  ;;  %5365 = vmatprep.mubr.msk.f32.mxu0 %vm444_vm1, %v7467_v33  ;;  %v1153_v33 = vrot.slane %v6029_v55, 2 }
  0xd2   : > { %v2782_v53 = vsel %vm2322_vm3, %v2779_v59, %v2781_v47  ;;  %v3091_v59 = vsel %vm3086_vm5, %v3088_v16, %v3090_v50  ;;  %v3093_v8 = vsel %vm3086_vm5, %v3090_v50, %v3092_v35  ;;  %v3095_v16 = vsel %vm3086_vm5, %v3092_v35, %v3094_v18 }
  0xd3   : > { %v6738_v48 = vsel %vm1109_vm4, %v1151_v15, %v1153_v33  ;;  %v1161_v15 = vrot.slane %v6090_v56, 2 }
  0xd4   : > { %5103 = vmatmul.mubr.msk.f32.gmra.mrb[16].mxu1 %vm444_vm1, %v6695_v40  ;;  %5366 = vmatmul.mubr.msk.f32.gmra.mrb[34].mxu0 %vm444_vm1, %v2778_v22  ;;  %v1155_v22 = vrot.slane %v6034_v60, 2 }
  0xd5   : > { %5105 = vmatprep.mubr.msk.f32.mxu1 %vm444_vm1, %v6705_v10  ;;  %5368 = vmatprep.mubr.msk.f32.mxu0 %vm444_vm1, %v2780_v39  ;;  %v1159_v39 = vrot.slane %v6077_v44, 2 }
  0xd6   : > { %v6744_v47 = vsel %vm1109_vm4, %v1153_v33, %v1155_v22  ;;  %v3098_v33 = vrot.slane %v5963_v61, 5  ;;  %v3104_v61 = vrot.slane %v5983_v19, 5 }
  0xd7   : > { %v6763_v50 = vsel %vm1109_vm4, %v1157_v3, %v1159_v39 }
  0xd8   : > { %5106 = vmatmul.mubr.msk.f32.gmra.mrb[18].mxu1 %vm444_vm1, %v6720_v30  ;;  %5369 = vmatmul.mubr.msk.f32.gmra.mrb[36].mxu0 %vm444_vm1, %v2782_v53  ;;  %v3096_v53 = vrot.slane %v5958_v57, 5  ;;  %v3100_v57 = vrot.slane %v5967_v1, 5 }
  0xd9   : > { %5108 = vmatprep.mubr.msk.f32.mxu1 %vm444_vm1, %v6726_v27  ;;  %5373 = vmatprep.mubr.msk.f32.mxu0 %vm444_vm1, %v3089_v36  ;;  %v6756_v36 = vsel %vm1109_vm4, %v1155_v22, %v1157_v3  ;;  %v1165_v22 = vrot.slane %v6119_v20, 2  ;;  %v3102_v3 = vrot.slane %v5978_v11, 5  ;;  %v3108_v11 = vrot.slane %v6000_v31, 5 }
  0xda   : > { %v3099_v35 = vsel %vm3086_vm5, %v3096_v53, %v3098_v33  ;;  %v3101_v1 = vsel %vm3086_vm5, %v3098_v33, %v3100_v57  ;;  %v3106_v33 = vrot.slane %v5995_v26, 5  ;;  %v3112_v26 = vrot.slane %v6017_v46, 5 }
  0xdb   : > { %v3105_v19 = vsel %vm3086_vm5, %v3102_v3, %v3104_v61 }
  0xdc   : > { %5109 = vmatmul.mubr.msk.f32.gmra.mrb[20].mxu1 %vm444_vm1, %v6738_v48  ;;  %5374 = vmatmul.mubr.msk.f32.vlgmr.msra.gmra.mrb[0].mxu0 %vm444_vm1, %v3091_v59  ;;  %v3097_v59 = vsel %vm3086_vm5, %v3094_v18, %v3096_v53  ;;  %v3103_v53 = vsel %vm3086_vm5, %v3100_v57, %v3102_v3  ;;  %v3109_v31 = vsel %vm3086_vm5, %v3106_v33, %v3108_v11 }
  0xdd   : > { %5431 = vmatpush3.msra.mxu0 %v6487_v4  ;;  %5111 = vmatprep.mubr.msk.f32.mxu1 %vm444_vm1, %v6744_v47  ;;  %v1163_v4 = vrot.slane %v6098_v62, 2 }
  0xde   : > { %5376 = vmatprep.mubr.msk.f32.mxu0 %vm444_vm1, %v3093_v8  ;;  %v6775_v8 = vsel %vm1109_vm4, %v1159_v39, %v1161_v15 }
  0xdf   : > { %v6781_v18 = vsel %vm1109_vm4, %v1161_v15, %v1163_v4  ;;  %v6793_v39 = vsel %vm1109_vm4, %v1163_v4, %v1165_v22  ;;  %v1169_v15 = vrot.slane %v6147_v34, 2  ;;  %v1173_v4 = vrot.slane %v6178_v54, 2 }
  0xe0   : > { %5112 = vmatmul.mubr.msk.f32.gmra.mrb[22].mxu1 %vm444_vm1, %v6756_v36  ;;  %5377 = vmatmul.mubr.msk.f32.gmra.mrb[2].mxu0 %vm444_vm1, %v3095_v16  ;;  %v1167_v16 = vrot.slane %v6125_v23, 2 }
  0xe1   : > { %5114 = vmatprep.mubr.msk.f32.mxu1 %vm444_vm1, %v6763_v50  ;;  %5379 = vmatprep.mubr.msk.f32.mxu0 %vm444_vm1, %v3097_v59 }
  0xe2   : > { %v6799_v59 = vsel %vm1109_vm4, %v1165_v22, %v1167_v16  ;;  %v6811_v57 = vsel %vm1109_vm4, %v1167_v16, %v1169_v15  ;;  %v3110_v22 = vrot.slane %v6012_v41, 5  ;;  %v1177_v16 = vrot.slane %v6200_v38, 2 }
  0xe3   : > { %v3116_v41 = vrot.slane %v6034_v60, 5 }
  0xe4   : > { %5115 = vmatmul.mubr.msk.f32.gmra.mrb[24].mxu1 %vm444_vm1, %v6775_v8  ;;  %5380 = vmatmul.mubr.msk.f32.gmra.mrb[4].mxu0 %vm444_vm1, %v3099_v35  ;;  %v1171_v35 = vrot.slane %v6154_v42, 2  ;;  %v3113_v46 = vsel %vm3086_vm5, %v3110_v22, %v3112_v26 }
  0xe5   : > { %5117 = vmatprep.mubr.msk.f32.mxu1 %vm444_vm1, %v6781_v18  ;;  %5382 = vmatprep.mubr.msk.f32.mxu0 %vm444_vm1, %v3101_v1  ;;  %v3107_v1 = vsel %vm3086_vm5, %v3104_v61, %v3106_v33 }
  0xe6   : > { %v6817_v3 = vsel %vm1109_vm4, %v1169_v15, %v1171_v35  ;;  %v6829_v61 = vsel %vm1109_vm4, %v1171_v35, %v1173_v4  ;;  %v3114_v15 = vrot.slane %v6029_v55, 5  ;;  %v1181_v35 = vrot.slane %v6231_v58, 2 }
  0xe7   : > { %v3120_v55 = vrot.slane %v6077_v44, 5 }
  0xe8   : > { %5118 = vmatmul.mubr.msk.f32.gmra.mrb[26].mxu1 %vm444_vm1, %v6793_v39  ;;  %5383 = vmatmul.mubr.msk.f32.gmra.mrb[6].mxu0 %vm444_vm1, %v3103_v53  ;;  %v1175_v53 = vrot.slane %v6183_v2, 2  ;;  %v3117_v60 = vsel %vm3086_vm5, %v3114_v15, %v3116_v41 }
  0xe9   : > { %5120 = vmatprep.mubr.msk.f32.mxu1 %vm444_vm1, %v6799_v59  ;;  %5385 = vmatprep.mubr.msk.f32.mxu0 %vm444_vm1, %v3105_v19  ;;  %v3111_v19 = vsel %vm3086_vm5, %v3108_v11, %v3110_v22 }
  0xea   : > { %v6835_v33 = vsel %vm1109_vm4, %v1173_v4, %v1175_v53  ;;  %v6847_v11 = vsel %vm1109_vm4, %v1175_v53, %v1177_v16  ;;  %v3118_v4 = vrot.slane %v6046_v6, 5  ;;  %v1185_v53 = vrot.slane %v6256_v29, 2 }
  0xec   : > { %5121 = vmatmul.mubr.msk.f32.gmra.mrb[28].mxu1 %vm444_vm1, %v6811_v57  ;;  %5386 = vmatmul.mubr.msk.f32.gmra.mrb[8].mxu0 %vm444_vm1, %v3107_v1  ;;  %v1179_v1 = vrot.slane %v6207_v32, 2  ;;  %v3121_v44 = vsel %vm3086_vm5, %v3118_v4, %v3120_v55 }
  0xed   : > { %5123 = vmatprep.mubr.msk.f32.mxu1 %vm444_vm1, %v6817_v3  ;;  %5388 = vmatprep.mubr.msk.f32.mxu0 %vm444_vm1, %v3109_v31  ;;  %v3115_v31 = vsel %vm3086_vm5, %v3112_v26, %v3114_v15 }
  0xee   : > { %v6853_v22 = vsel %vm1109_vm4, %v1177_v16, %v1179_v1  ;;  %v6865_v26 = vsel %vm1109_vm4, %v1179_v1, %v1181_v35  ;;  %v3122_v16 = vrot.slane %v6090_v56, 5  ;;  %v3126_v1 = vrot.slane %v6119_v20, 5 }
  0xf0   : > { %5124 = vmatmul.mubr.msk.f32.gmra.mrb[30].mxu1 %vm444_vm1, %v6829_v61  ;;  %5389 = vmatmul.mubr.msk.f32.gmra.mrb[10].mxu0 %vm444_vm1, %v3111_v19  ;;  %v1183_v19 = vrot.slane %v6236_v24, 2 }
  0xf1   : > { %5126 = vmatprep.mubr.msk.f32.mxu1 %vm444_vm1, %v6835_v33  ;;  %5391 = vmatprep.mubr.msk.f32.mxu0 %vm444_vm1, %v3113_v46  ;;  %v3119_v46 = vsel %vm3086_vm5, %v3116_v41, %v3118_v4  ;;  %v3128_v4 = vrot.slane %v6125_v23, 5 }
  0xf2   : > { %v6871_v15 = vsel %vm1109_vm4, %v1181_v35, %v1183_v19  ;;  %v6884_v41 = vsel %vm1109_vm4, %v1183_v19, %v1185_v53 }
  0xf3   : > { %v3129_v19 = vsel %vm3086_vm5, %v3126_v1, %v3128_v4 }
  0xf4   : > { %5127 = vmatmul.mubr.msk.f32.gmra.mrb[32].mxu1 %vm444_vm1, %v6847_v11  ;;  %5392 = vmatmul.mubr.msk.f32.gmra.mrb[12].mxu0 %vm444_vm1, %v3115_v31  ;;  %v3124_v31 = vrot.slane %v6098_v62, 5 }
  0xf5   : > { %5129 = vmatprep.mubr.msk.f32.mxu1 %vm444_vm1, %v6853_v22  ;;  %5394 = vmatprep.mubr.msk.f32.mxu0 %vm444_vm1, %v3117_v60  ;;  %v3123_v60 = vsel %vm3086_vm5, %v3120_v55, %v3122_v16  ;;  %v3130_v55 = vrot.slane %v6147_v34, 5 }
  0xf6   : > { %v3125_v35 = vsel %vm3086_vm5, %v3122_v16, %v3124_v31  ;;  %v3134_v16 = vrot.slane %v6178_v54, 5 }
  0xf8   : > { %5130 = vmatmul.mubr.msk.f32.gmra.mrb[34].mxu1 %vm444_vm1, %v6865_v26  ;;  %5395 = vmatmul.mubr.msk.f32.gmra.mrb[14].mxu0 %vm444_vm1, %v3119_v46  ;;  %v3132_v46 = vrot.slane %v6154_v42, 5 }
  0xf9   : > { %5132 = vmatprep.mubr.msk.f32.mxu1 %vm444_vm1, %v6871_v15  ;;  %5397 = vmatprep.mubr.msk.f32.mxu0 %vm444_vm1, %v3121_v44  ;;  %v3127_v44 = vsel %vm3086_vm5, %v3124_v31, %v3126_v1  ;;  %v5803_v31 = vld [vmem:[%s7357_s2 + $0x20] sm:$0xff]  ;;  %v3138_v1 = vrot.slane %v6200_v38, 5 }
  0xfc   : > { %5133 = vmatmul.mubr.msk.f32.gmra.mrb[36].mxu1 %vm444_vm1, %v6884_v41  ;;  %5398 = vmatmul.mubr.msk.f32.gmra.mrb[16].mxu0 %vm444_vm1, %v3123_v60  ;;  %v3133_v60 = vsel %vm3086_vm5, %v3130_v55, %v3132_v46 }
  0xfd   : > { %5137 = vmatprep.mubr.msk.f32.mxu1 %vm444_vm1, %v6581_v9  ;;  %5400 = vmatprep.mubr.msk.f32.mxu0 %vm444_vm1, %v3125_v35  ;;  %v3131_v9 = vsel %vm3086_vm5, %v3128_v4, %v3130_v55  ;;  %v3140_v4 = vrot.slane %v6207_v32, 5  ;;  %v3144_v55 = vrot.slane %v6236_v24, 5 }
 0x100   : > { %5138 = vmatmul.mubr.msk.f32.vlgmr.msra.gmra.mrb[0].mxu1 %vm444_vm1, %v6593_v63  ;;  %5401 = vmatmul.mubr.msk.f32.gmra.mrb[18].mxu0 %vm444_vm1, %v3127_v44  ;;  %v3136_v63 = vrot.slane %v6183_v2, 5  ;;  %v3141_v44 = vsel %vm3086_vm5, %v3138_v1, %v3140_v4 }
 0x101   : > { %5140 = vmatprep.mubr.msk.f32.mxu1 %vm444_vm1, %v6597_v17  ;;  %5403 = vmatprep.mubr.msk.f32.mxu0 %vm444_vm1, %v3129_v19  ;;  %v3135_v17 = vsel %vm3086_vm5, %v3132_v46, %v3134_v16  ;;  %v7470_v46 = vld [vmem:[#allocation33_spill] sm:$0xff] }
 0x102   : > { %5490 = vmatpush3.msra.mxu1 %v5803_v31  ;;  %v3137_v35 = vsel %vm3086_vm5, %v3134_v16, %v3136_v63  ;;  %v7471_v31 = vld [vmem:[#allocation34_spill] sm:$0xff] }
 0x104   : > { %5141 = vmatmul.mubr.msk.f32.gmra.mrb[2].mxu1 %vm444_vm1, %v6609_v52  ;;  %5404 = vmatmul.mubr.msk.f32.gmra.mrb[20].mxu0 %vm444_vm1, %v3131_v9  ;;  %v3139_v52 = vsel %vm3086_vm5, %v3136_v63, %v3138_v1  ;;  %v3148_v9 = vrot.slane %v7470_v46, 5 }
 0x105   : > { %5143 = vmatprep.mubr.msk.f32.mxu1 %vm444_vm1, %v6613_v7  ;;  %5406 = vmatprep.mubr.msk.f32.mxu0 %vm444_vm1, %v3133_v60  ;;  %v3142_v7 = vrot.slane %v6231_v58, 5  ;;  %v3152_v60 = vrot.slane %v7471_v31, 5 }
 0x107   : > { %v3145_v19 = vsel %vm3086_vm5, %v3142_v7, %v3144_v55 }
 0x108   : > { %5144 = vmatmul.mubr.msk.f32.gmra.mrb[4].mxu1 %vm444_vm1, %v6625_v12  ;;  %5407 = vmatmul.mubr.msk.f32.gmra.mrb[22].mxu0 %vm444_vm1, %v3135_v17  ;;  %v3143_v12 = vsel %vm3086_vm5, %v3140_v4, %v3142_v7  ;;  %v3156_v17 = vrot.slane %v7468_v5, 5  ;;  %v7473_v4 = vld [vmem:[#allocation22_spill] sm:$0xff] }
 0x109   : > { %5146 = vmatprep.mubr.msk.f32.mxu1 %vm444_vm1, %v6629_v14  ;;  %5409 = vmatprep.mubr.msk.f32.mxu0 %vm444_vm1, %v3137_v35  ;;  %v3146_v14 = vrot.slane %v6256_v29, 5 }
 0x10b   : > { %v3149_v16 = vsel %vm3086_vm5, %v3146_v14, %v3148_v9 }
 0x10c   : > { %5147 = vmatmul.mubr.msk.f32.gmra.mrb[6].mxu1 %vm444_vm1, %v6641_v28  ;;  %5410 = vmatmul.mubr.msk.f32.gmra.mrb[24].mxu0 %vm444_vm1, %v3139_v52  ;;  %v3147_v28 = vsel %vm3086_vm5, %v3144_v55, %v3146_v14  ;;  %v3160_v52 = vrot.slane %v7473_v4, 5  ;;  %v7475_v55 = vld [vmem:[#allocation5_spill] sm:$0xff]  ;;  %v7476_v14 = vld [vmem:[#allocation6_spill] sm:$0xff] }
 0x10d   : > { %5149 = vmatprep.mubr.msk.f32.mxu1 %vm444_vm1, %v6645_v51  ;;  %5412 = vmatprep.mubr.msk.f32.mxu0 %vm444_vm1, %v3141_v44  ;;  %v3150_v51 = vrot.slane %v6425_v25, 5 }
 0x10f   : > { %v3153_v63 = vsel %vm3086_vm5, %v3150_v51, %v3152_v60 }
 0x110   : > { %5150 = vmatmul.mubr.msk.f32.gmra.mrb[8].mxu1 %vm444_vm1, %v6658_v43  ;;  %5413 = vmatmul.mubr.msk.f32.gmra.mrb[26].mxu0 %vm444_vm1, %v3143_v12  ;;  %v3151_v43 = vsel %vm3086_vm5, %v3148_v9, %v3150_v51  ;;  %v3536_v12 = vrot.slane %v7475_v55, 6 }
 0x111   : > { %5152 = vmatprep.mubr.msk.f32.mxu1 %vm444_vm1, %v6664_v13  ;;  %5415 = vmatprep.mubr.msk.f32.mxu0 %vm444_vm1, %v3145_v19  ;;  %v3154_v13 = vrot.slane %v6241_v0, 5  ;;  %v3537_v19 = vrot.slane %v7476_v14, 6  ;;  %v7486_v14 = vld [vmem:[#allocation17_spill] sm:$0xff] }
 0x113   : > { %v3157_v35 = vsel %vm3086_vm5, %v3154_v13, %v3156_v17  ;;  %v3538_v9 = vsel %vm3535_vm6, %v3536_v12, %v3537_v19 }
 0x114   : > { %5153 = vmatmul.mubr.msk.f32.gmra.mrb[10].mxu1 %vm444_vm1, %v6680_v37  ;;  %5416 = vmatmul.mubr.msk.f32.gmra.mrb[28].mxu0 %vm444_vm1, %v3147_v28  ;;  %v3155_v37 = vsel %vm3086_vm5, %v3152_v60, %v3154_v13  ;;  %v7477_v28 = vld [vmem:[#allocation8_spill] sm:$0xff]  ;;  %v7480_v13 = vld [vmem:[#allocation11_spill] sm:$0xff] }
 0x115   : > { %5155 = vmatprep.mubr.msk.f32.mxu1 %vm444_vm1, %v6687_v21  ;;  %5418 = vmatprep.mubr.msk.f32.mxu0 %vm444_vm1, %v3149_v16  ;;  %v7472_v21 = vld [vmem:[#allocation21_spill] sm:$0xff]  ;;  %v3541_v51 = vrot.slane %v7477_v28, 6  ;;  %v7488_v28 = vld [vmem:[#allocation19_spill] sm:$0xff] }
 0x116   : > { %v3158_v1 = vrot.slane %v7472_v21, 5  ;;  %v7478_v16 = vld [vmem:[#allocation9_spill] sm:$0xff] }
 0x117   : > { %v3545_v60 = vrot.slane %v7478_v16, 6  ;;  %v7489_v16 = vld [vmem:[#allocation20_spill] sm:$0xff] }
 0x118   : > { %5156 = vmatmul.mubr.msk.f32.gmra.mrb[12].mxu1 %vm444_vm1, %v6695_v40  ;;  %5419 = vmatmul.mubr.msk.f32.gmra.mrb[30].mxu0 %vm444_vm1, %v3151_v43  ;;  %v3159_v40 = vsel %vm3086_vm5, %v3156_v17, %v3158_v1  ;;  %v3161_v44 = vsel %vm3086_vm5, %v3158_v1, %v3160_v52  ;;  %v7482_v1 = vld [vmem:[#allocation13_spill] sm:$0xff] }
 0x119   : > { %5158 = vmatprep.mubr.msk.f32.mxu1 %vm444_vm1, %v6705_v10  ;;  %5421 = vmatprep.mubr.msk.f32.mxu0 %vm444_vm1, %v3153_v63  ;;  %v7474_v10 = vld [vmem:[#allocation23_spill] sm:$0xff]  ;;  %v3549_v63 = vrot.slane %v7480_v13, 6  ;;  %v3573_v13 = vrot.slane %v6098_v62, 6 }
 0x11a   : > { %v3162_v7 = vrot.slane %v7474_v10, 5 }
 0x11c   : > { %5159 = vmatmul.mubr.msk.f32.gmra.mrb[14].mxu1 %vm444_vm1, %v6720_v30  ;;  %5422 = vmatmul.mubr.msk.f32.gmra.mrb[32].mxu0 %vm444_vm1, %v3155_v37  ;;  %v3539_v30 = vrot.slane %v7462_v45, 6 }
 0x11d   : > { %5161 = vmatprep.mubr.msk.f32.mxu1 %vm444_vm1, %v6726_v27  ;;  %5424 = vmatprep.mubr.msk.f32.mxu0 %vm444_vm1, %v3157_v35  ;;  %v3163_v27 = vsel %vm3086_vm5, %v3160_v52, %v3162_v7  ;;  %v3553_v35 = vrot.slane %v7482_v1, 6  ;;  %v7484_v7 = vld [vmem:[#allocation15_spill] sm:$0xff] }
 0x11e   : > { %v3542_v45 = vsel %vm3535_vm6, %v3539_v30, %v3541_v51 }
 0x120   : > { %5162 = vmatmul.mubr.msk.f32.gmra.mrb[16].mxu1 %vm444_vm1, %v6738_v48  ;;  %5425 = vmatmul.mubr.msk.f32.gmra.mrb[34].mxu0 %vm444_vm1, %v3159_v40  ;;  %v3540_v48 = vsel %vm3535_vm6, %v3537_v19, %v3539_v30  ;;  %v3561_v19 = vrot.slane %v7486_v14, 6 }
 0x121   : > { %5164 = vmatprep.mubr.msk.f32.mxu1 %vm444_vm1, %v6744_v47  ;;  %5427 = vmatprep.mubr.msk.f32.mxu0 %vm444_vm1, %v3161_v44  ;;  %v3543_v47 = vrot.slane %v5943_v49, 6  ;;  %v3557_v44 = vrot.slane %v7484_v7, 6 }
 0x123   : > { %v3546_v49 = vsel %vm3535_vm6, %v3543_v47, %v3545_v60 }
 0x124   : > { %5165 = vmatmul.mubr.msk.f32.gmra.mrb[18].mxu1 %vm444_vm1, %v6756_v36  ;;  %5428 = vmatmul.mubr.msk.f32.gmra.mrb[36].mxu0 %vm444_vm1, %v3163_v27  ;;  %v3544_v36 = vsel %vm3535_vm6, %v3541_v51, %v3543_v47  ;;  %v3565_v51 = vrot.slane %v7488_v28, 6  ;;  %v1931_v28 = vrot.slane %v6183_v2, 3 }
 0x125   : > { %5167 = vmatprep.mubr.msk.f32.mxu1 %vm444_vm1, %v6763_v50  ;;  %5432 = vmatprep.mubr.msk.f32.mxu0 %vm444_vm1, %v3538_v9  ;;  %v7479_v50 = vld [vmem:[#allocation10_spill] sm:$0xff]  ;;  %v1562_v9 = vrot.slane %v7470_v46, 2 }
 0x126   : > { %v3547_v43 = vrot.slane %v7479_v50, 6  ;;  %v3571_v50 = vrot.slane %v6090_v56, 6 }
 0x127   : > { %v1563_v47 = vsel %vm1109_vm4, %v1185_v53, %v1562_v9  ;;  %v1568_v53 = vrot.slane %v6241_v0, 2 }
 0x128   : > { %5168 = vmatmul.mubr.msk.f32.gmra.mrb[20].mxu1 %vm444_vm1, %v6775_v8  ;;  %5433 = vmatmul.mubr.msk.f32.vlgmr.msra.gmra.mrb[0].mxu0 %vm444_vm1, %v3540_v48  ;;  %v3548_v8 = vsel %vm3535_vm6, %v3545_v60, %v3547_v43  ;;  %v3550_v37 = vsel %vm3535_vm6, %v3547_v43, %v3549_v63  ;;  %v3567_v48 = vrot.slane %v6046_v6, 6  ;;  %v3569_v60 = vrot.slane %v7489_v16, 6 }
 0x129   : > { %5170 = vmatprep.mubr.msk.f32.mxu1 %vm444_vm1, %v6781_v18  ;;  %5435 = vmatprep.mubr.msk.f32.mxu0 %vm444_vm1, %v3542_v45  ;;  %v7481_v18 = vld [vmem:[#allocation12_spill] sm:$0xff] }
 0x12a   : > { %v3551_v17 = vrot.slane %v7481_v18, 6  ;;  %v1917_v18 = vrot.slane %v6090_v56, 3 }
 0x12c   : > { %5171 = vmatmul.mubr.msk.f32.gmra.mrb[22].mxu1 %vm444_vm1, %v6793_v39  ;;  %5436 = vmatmul.mubr.msk.f32.gmra.mrb[2].mxu0 %vm444_vm1, %v3544_v36  ;;  %v3552_v39 = vsel %vm3535_vm6, %v3549_v63, %v3551_v17  ;;  %v3554_v40 = vsel %vm3535_vm6, %v3551_v17, %v3553_v35  ;;  %v3568_v36 = vsel %vm3535_vm6, %v3565_v51, %v3567_v48  ;;  %v3575_v17 = vrot.slane %v6119_v20, 6 }
 0x12d   : > { %5173 = vmatprep.mubr.msk.f32.mxu1 %vm444_vm1, %v6799_v59  ;;  %5438 = vmatprep.mubr.msk.f32.mxu0 %vm444_vm1, %v3546_v49  ;;  %v7483_v59 = vld [vmem:[#allocation14_spill] sm:$0xff]  ;;  %v3570_v49 = vsel %vm3535_vm6, %v3567_v48, %v3569_v60  ;;  %v3591_v48 = vrot.slane %v6231_v58, 6 }
 0x12e   : > { %v3555_v52 = vrot.slane %v7483_v59, 6  ;;  %v3577_v59 = vrot.slane %v6125_v23, 6 }
 0x130   : > { %5174 = vmatmul.mubr.msk.f32.gmra.mrb[24].mxu1 %vm444_vm1, %v6811_v57  ;;  %5439 = vmatmul.mubr.msk.f32.gmra.mrb[4].mxu0 %vm444_vm1, %v3548_v8  ;;  %v3556_v57 = vsel %vm3535_vm6, %v3553_v35, %v3555_v52  ;;  %v3558_v12 = vsel %vm3535_vm6, %v3555_v52, %v3557_v44  ;;  %v3572_v8 = vsel %vm3535_vm6, %v3569_v60, %v3571_v50  ;;  %v1921_v52 = vrot.slane %v6119_v20, 3 }
 0x131   : > { %5176 = vmatprep.mubr.msk.f32.mxu1 %vm444_vm1, %v6817_v3  ;;  %5441 = vmatprep.mubr.msk.f32.mxu0 %vm444_vm1, %v3550_v37  ;;  %v7485_v3 = vld [vmem:[#allocation16_spill] sm:$0xff]  ;;  %v7490_v37 = vrot.slane %v6046_v6, 3  ;;  %v3574_v35 = vsel %vm3535_vm6, %v3571_v50, %v3573_v13  ;;  %v3576_v6 = vsel %vm3535_vm6, %v3573_v13, %v3575_v17  ;;  %v3578_v7 = vsel %vm3535_vm6, %v3575_v17, %v3577_v59 }
 0x132   : > { %v3559_v55 = vrot.slane %v7485_v3, 6  ;;  %v1937_v60 = vrot.slane %v6231_v58, 3  ;;  %v3597_v50 = vrot.slane %v7470_v46, 6  ;;  %v1945_v17 = vrot.slane %v6425_v25, 3 }
 0x134   : > { %5177 = vmatmul.mubr.msk.f32.gmra.mrb[26].mxu1 %vm444_vm1, %v6829_v61  ;;  %5442 = vmatmul.mubr.msk.f32.gmra.mrb[6].mxu0 %vm444_vm1, %v3552_v39  ;;  %v3560_v61 = vsel %vm3535_vm6, %v3557_v44, %v3559_v55  ;;  %v3562_v30 = vsel %vm3535_vm6, %v3559_v55, %v3561_v19  ;;  %v1919_v39 = vrot.slane %v6098_v62, 3  ;;  %v1923_v44 = vrot.slane %v6125_v23, 3 }
 0x135   : > { %5179 = vmatprep.mubr.msk.f32.mxu1 %vm444_vm1, %v6835_v33  ;;  %5444 = vmatprep.mubr.msk.f32.mxu0 %vm444_vm1, %v3554_v40  ;;  %v7487_v33 = vld [vmem:[#allocation18_spill] sm:$0xff]  ;;  %v3579_v40 = vrot.slane %v6147_v34, 6  ;;  %v1925_v55 = vrot.slane %v6147_v34, 3 }
 0x136   : > { %v3563_v27 = vrot.slane %v7487_v33, 6  ;;  %v1920_v62 = vsel %vm1873_vm2, %v1917_v18, %v1919_v39  ;;  %v1922_v20 = vsel %vm1873_vm2, %v1919_v39, %v1921_v52  ;;  %v1924_v23 = vsel %vm1873_vm2, %v1921_v52, %v1923_v44 }
 0x137   : > { %v3580_v3 = vsel %vm3535_vm6, %v3577_v59, %v3579_v40  ;;  %v1926_v34 = vsel %vm1873_vm2, %v1923_v44, %v1925_v55  ;;  %v3605_v39 = vrot.slane %v7468_v5, 6  ;;  %v3609_v52 = vrot.slane %v7473_v4, 6 }
 0x138   : > { %5180 = vmatmul.mubr.msk.f32.gmra.mrb[28].mxu1 %vm444_vm1, %v6847_v11  ;;  %5445 = vmatmul.mubr.msk.f32.gmra.mrb[8].mxu0 %vm444_vm1, %v3556_v57  ;;  %v3564_v11 = vsel %vm3535_vm6, %v3561_v19, %v3563_v27  ;;  %v3566_v45 = vsel %vm3535_vm6, %v3563_v27, %v3565_v51  ;;  %v3581_v57 = vrot.slane %v6154_v42, 6  ;;  %v1927_v19 = vrot.slane %v6154_v42, 3 }
 0x139   : > { %5182 = vmatprep.mubr.msk.f32.mxu1 %vm444_vm1, %v6853_v22  ;;  %5447 = vmatprep.mubr.msk.f32.mxu0 %vm444_vm1, %v3558_v12  ;;  %v1564_v22 = vrot.slane %v6425_v25, 2  ;;  %v3583_v12 = vrot.slane %v6178_v54, 6  ;;  %v1929_v27 = vrot.slane %v6178_v54, 3  ;;  %v3589_v51 = vrot.slane %v6207_v32, 6 }
 0x13a   : > { %v3582_v14 = vsel %vm3535_vm6, %v3579_v40, %v3581_v57  ;;  %v1928_v42 = vsel %vm1873_vm2, %v1925_v55, %v1927_v19 }
 0x13b   : > { %v3584_v33 = vsel %vm3535_vm6, %v3581_v57, %v3583_v12  ;;  %v1930_v54 = vsel %vm1873_vm2, %v1927_v19, %v1929_v27 }
 0x13c   : > { %5183 = vmatmul.mubr.msk.f32.gmra.mrb[30].mxu1 %vm444_vm1, %v6865_v26  ;;  %5448 = vmatmul.mubr.msk.f32.gmra.mrb[10].mxu0 %vm444_vm1, %v3560_v61  ;;  %v1566_v26 = vrot.slane %v7471_v31, 2  ;;  %v3585_v61 = vrot.slane %v6183_v2, 6  ;;  %v1932_v2 = vsel %vm1873_vm2, %v1929_v27, %v1931_v28 }
 0x13d   : > { %5185 = vmatprep.mubr.msk.f32.mxu1 %vm444_vm1, %v6871_v15  ;;  %5450 = vmatprep.mubr.msk.f32.mxu0 %vm444_vm1, %v3562_v30  ;;  %v1565_v15 = vsel %vm1109_vm4, %v1562_v9, %v1564_v22  ;;  %v3587_v30 = vrot.slane %v6200_v38, 6 }
 0x13e   : > { %v1567_v43 = vsel %vm1109_vm4, %v1564_v22, %v1566_v26  ;;  %v1569_v63 = vsel %vm1109_vm4, %v1566_v26, %v1568_v53  ;;  %v3586_v9 = vsel %vm3535_vm6, %v3583_v12, %v3585_v61  ;;  %v1933_v22 = vrot.slane %v6200_v38, 3 }
 0x13f   : > { %v3593_v26 = vrot.slane %v6236_v24, 6  ;;  %v1939_v53 = vrot.slane %v6236_v24, 3 }
 0x140   : > { %5186 = vmatmul.mubr.msk.f32.gmra.mrb[32].mxu1 %vm444_vm1, %v6884_v41  ;;  %5451 = vmatmul.mubr.msk.f32.gmra.mrb[12].mxu0 %vm444_vm1, %v3564_v11  ;;  %v1915_v41 = vrot.slane %v7489_v16, 3  ;;  %v3588_v11 = vsel %vm3535_vm6, %v3585_v61, %v3587_v30  ;;  %v1934_v38 = vsel %vm1873_vm2, %v1931_v28, %v1933_v22  ;;  %v3592_v16 = vsel %vm3535_vm6, %v3589_v51, %v3591_v48 }
 0x141   : > { %5188 = vmatprep.mubr.msk.f32.mxu1 %vm444_vm1, %v1563_v47  ;;  %5453 = vmatprep.mubr.msk.f32.mxu0 %vm444_vm1, %v3566_v45  ;;  %v3590_v47 = vsel %vm3535_vm6, %v3587_v30, %v3589_v51  ;;  %v1935_v45 = vrot.slane %v6207_v32, 3  ;;  %v1940_v24 = vsel %vm1873_vm2, %v1937_v60, %v1939_v53 }
 0x142   : > { %v1916_v1 = vsel %vm1873_vm2, %v7490_v37, %v1915_v41  ;;  %v1918_v56 = vsel %vm1873_vm2, %v1915_v41, %v1917_v18  ;;  %v3599_v41 = vrot.slane %v6425_v25, 6  ;;  %v3603_v37 = vrot.slane %v6241_v0, 6 }
 0x143   : > { %v1936_v32 = vsel %vm1873_vm2, %v1933_v22, %v1935_v45  ;;  %v1938_v58 = vsel %vm1873_vm2, %v1935_v45, %v1937_v60 }
 0x144   : > { %5189 = vmatmul.mubr.msk.f32.gmra.mrb[34].mxu1 %vm444_vm1, %v1565_v15  ;;  %5454 = vmatmul.mubr.msk.f32.gmra.mrb[14].mxu0 %vm444_vm1, %v3568_v36  ;;  %v3595_v15 = vrot.slane %v6256_v29, 6  ;;  %v3594_v36 = vsel %vm3535_vm6, %v3591_v48, %v3593_v26  ;;  %v3600_v18 = vsel %vm3535_vm6, %v3597_v50, %v3599_v41  ;;  %v3606_v5 = vsel %vm3535_vm6, %v3603_v37, %v3605_v39 }
 0x145   : > { %5191 = vmatprep.mubr.msk.f32.mxu1 %vm444_vm1, %v1567_v43  ;;  %5456 = vmatprep.mubr.msk.f32.mxu0 %vm444_vm1, %v3570_v49  ;;  %v1941_v49 = vrot.slane %v6256_v29, 3 }
 0x146   : > { %v3596_v43 = vsel %vm3535_vm6, %v3593_v26, %v3595_v15  ;;  %v3598_v13 = vsel %vm3535_vm6, %v3595_v15, %v3597_v50 }
 0x147   : > { %v1942_v29 = vsel %vm1873_vm2, %v1939_v53, %v1941_v49 }
 0x148   : > { %5192 = vmatmul.mubr.msk.f32.gmra.mrb[36].mxu1 %vm444_vm1, %v1569_v63  ;;  %5457 = vmatmul.mubr.msk.f32.gmra.mrb[16].mxu0 %vm444_vm1, %v3572_v8  ;;  %v1943_v63 = vrot.slane %v7470_v46, 3  ;;  %v3601_v8 = vrot.slane %v7471_v31, 6 }
 0x149   : > { %5226 = vmatprep.mubr.msk.f32.mxu1 %vm444_vm1, %v1916_v1  ;;  %5459 = vmatprep.mubr.msk.f32.mxu0 %vm444_vm1, %v3574_v35  ;;  %v1947_v35 = vrot.slane %v7471_v31, 3 }
 0x14a   : > { %v1944_v46 = vsel %vm1873_vm2, %v1941_v49, %v1943_v63  ;;  %v3602_v1 = vsel %vm3535_vm6, %v3599_v41, %v3601_v8  ;;  %v1946_v25 = vsel %vm1873_vm2, %v1943_v63, %v1945_v17  ;;  %v3604_v59 = vsel %vm3535_vm6, %v3601_v8, %v3603_v37 }
 0x14b   : > { %v1948_v31 = vsel %vm1873_vm2, %v1945_v17, %v1947_v35 }
 0x14c   : > { %5227 = vmatmul.mubr.msk.f32.vlgmr.msra.gmra.mrb[20].mxu1 %vm444_vm1, %v1918_v56  ;;  %5460 = vmatmul.mubr.msk.f32.gmra.mrb[18].mxu0 %vm444_vm1, %v3576_v6  ;;  %v1949_v56 = vrot.slane %v6241_v0, 3  ;;  %v3607_v6 = vrot.slane %v7472_v21, 6  ;;  %v3611_v21 = vrot.slane %v7474_v10, 6 }
 0x14d   : > { %5229 = vmatprep.mubr.msk.f32.mxu1 %vm444_vm1, %v1920_v62  ;;  %5462 = vmatprep.mubr.msk.f32.mxu0 %vm444_vm1, %v3578_v7 }
 0x14e   : > { %v1950_v40 = vsel %vm1873_vm2, %v1947_v35, %v1949_v56  ;;  %v3608_v0 = vsel %vm3535_vm6, %v3605_v39, %v3607_v6  ;;  %v3610_v62 = vsel %vm3535_vm6, %v3607_v6, %v3609_v52  ;;  %v3612_v4 = vsel %vm3535_vm6, %v3609_v52, %v3611_v21 }
 0x150   : > { %5230 = vmatmul.mubr.msk.f32.gmra.mrb[22].mxu1 %vm444_vm1, %v1922_v20  ;;  %5463 = vmatmul.mubr.msk.f32.gmra.mrb[20].mxu0 %vm444_vm1, %v3580_v3 }
 0x151   : > { %5232 = vmatprep.mubr.msk.f32.mxu1 %vm444_vm1, %v1924_v23  ;;  %5465 = vmatprep.mubr.msk.f32.mxu0 %vm444_vm1, %v3582_v14 }
 0x154   : > { %5233 = vmatmul.mubr.msk.f32.gmra.mrb[24].mxu1 %vm444_vm1, %v1926_v34  ;;  %5466 = vmatmul.mubr.msk.f32.gmra.mrb[22].mxu0 %vm444_vm1, %v3584_v33 }
 0x155   : > { %5235 = vmatprep.mubr.msk.f32.mxu1 %vm444_vm1, %v1928_v42  ;;  %5468 = vmatprep.mubr.msk.f32.mxu0 %vm444_vm1, %v3586_v9 }
 0x158   : > { %5236 = vmatmul.mubr.msk.f32.gmra.mrb[26].mxu1 %vm444_vm1, %v1930_v54  ;;  %5469 = vmatmul.mubr.msk.f32.gmra.mrb[24].mxu0 %vm444_vm1, %v3588_v11  ;;  %v7224_v11 = vld [vmem:[%s7358_s3] ss:$0 sm:$0xff] }
 0x159   : > { %5238 = vmatprep.mubr.msk.f32.mxu1 %vm444_vm1, %v1932_v2  ;;  %5471 = vmatprep.mubr.msk.f32.mxu0 %vm444_vm1, %v3590_v47 }
 0x15c   : > { %5239 = vmatmul.mubr.msk.f32.gmra.mrb[28].mxu1 %vm444_vm1, %v1934_v38  ;;  %5472 = vmatmul.mubr.msk.f32.gmra.mrb[26].mxu0 %vm444_vm1, %v3592_v16 }
 0x15d   : > { %5241 = vmatprep.mubr.msk.f32.mxu1 %vm444_vm1, %v1936_v32  ;;  %5474 = vmatprep.mubr.msk.f32.mxu0 %vm444_vm1, %v3594_v36 }
 0x160   : > { %5242 = vmatmul.mubr.msk.f32.gmra.mrb[30].mxu1 %vm444_vm1, %v1938_v58  ;;  %5475 = vmatmul.mubr.msk.f32.gmra.mrb[28].mxu0 %vm444_vm1, %v3596_v43 }
 0x161   : > { %5244 = vmatprep.mubr.msk.f32.mxu1 %vm444_vm1, %v1940_v24  ;;  %5477 = vmatprep.mubr.msk.f32.mxu0 %vm444_vm1, %v3598_v13 }
 0x164   : > { %5245 = vmatmul.mubr.msk.f32.gmra.mrb[32].mxu1 %vm444_vm1, %v1942_v29  ;;  %5478 = vmatmul.mubr.msk.f32.gmra.mrb[30].mxu0 %vm444_vm1, %v3600_v18 }
 0x165   : > { %5247 = vmatprep.mubr.msk.f32.mxu1 %vm444_vm1, %v1944_v46  ;;  %5480 = vmatprep.mubr.msk.f32.mxu0 %vm444_vm1, %v3602_v1 }
 0x168   : > { %5248 = vmatmul.mubr.msk.f32.gmra.mrb[34].mxu1 %vm444_vm1, %v1946_v25  ;;  %5481 = vmatmul.mubr.msk.f32.gmra.mrb[32].mxu0 %vm444_vm1, %v3604_v59 }
 0x169   : > { %5250 = vmatprep.mubr.msk.f32.mxu1 %vm444_vm1, %v1948_v31  ;;  %5483 = vmatprep.mubr.msk.f32.mxu0 %vm444_vm1, %v3606_v5 }
 0x16c   : > { %5251 = vmatmul.mubr.msk.f32.gmra.mrb[36].mxu1 %vm444_vm1, %v1950_v40  ;;  %5484 = vmatmul.mubr.msk.f32.gmra.mrb[34].mxu0 %vm444_vm1, %v3608_v0 }
 0x16d   : > { %5486 = vmatprep.mubr.msk.f32.mxu0 %vm444_vm1, %v3610_v62 }
 0x170   : > { %5487 = vmatmul.mubr.msk.f32.gmra.mrb[36].mxu0 %vm444_vm1, %v3612_v4 }
 0x1d3   : > { %v5139_v7 = vpop.f32.mrb[0].mxu1 }
 0x1d4   : > { %v1644_v44 = vpop.f32.mrb[1].mxu1 }
 0x1d7   : > { %v5142_v57 = vpop.f32.mrb[2].mxu1 }
 0x1d8   : > { %v1654_v20 = vpop.f32.mrb[3].mxu1 }
 0x1db   : > { %v5145_v3 = vpop.f32.mrb[4].mxu1 }
 0x1dc   : > { %v1664_v10 = vpop.f32.mrb[5].mxu1 }
 0x1df   : > { %v5148_v55 = vpop.f32.mrb[6].mxu1 }
 0x1e0   : > { %v1674_v12 = vpop.f32.mrb[7].mxu1 }
 0x1e3   : > { %v5151_v23 = vpop.f32.mrb[8].mxu1 }
 0x1e4   : > { %v1684_v14 = vpop.f32.mrb[9].mxu1 }
 0x1e7   : > { %v5154_v19 = vpop.f32.mrb[10].mxu1 }
 0x1e8   : > { %v1694_v61 = vpop.f32.mrb[11].mxu1 }
 0x1eb   : > { %v5157_v34 = vpop.f32.mrb[12].mxu1 }
 0x1ec   : > { %v7205_v33 = vpop.f32.mrb[13].mxu1 }
 0x1ef   : > { %v7207_v27 = vpop.f32.mrb[14].mxu1 }
 0x1f0   : > { %v7209_v30 = vpop.f32.mrb[15].mxu1 }
 0x1f3   : > { %v7212_v42 = vpop.f32.mrb[16].mxu1 }
 0x1f4   : > { %v7214_v9 = vpop.f32.mrb[17].mxu1 }
 0x1f7   : > { %v7217_v28 = vpop.f32.mrb[18].mxu1 }
 0x1f8   : > { %v7219_v51 = vpop.f32.mrb[19].mxu1 }
 0x1fb   : > { %v5434_v54 = vpop.f32.mrb[0].mxu0 }
 0x1fc   : > { %v5491_v22 = vadd.f32 %v5434_v54, %v5139_v7  ;;  %v3755_v48 = vpop.f32.mrb[1].mxu0 }
 0x1fd   : > { %v5492_v2 = vadd.f32 %v3755_v48, %v1644_v44 }
 0x1fe   : > { %v3990_v47 = vadd.f32 %v5491_v22, %v7224_v11 }
 0x1ff   : > { %v3989_v45 = vadd.f32 %v5492_v2, %v7224_v11  ;;  %v5437_v26 = vpop.f32.mrb[2].mxu0 }
 0x200   : > { %4028 = vst.msk [vmem:[%s7229_s5 + $0x8] sm:$0xff] %vm444_vm1, %v3990_v47  ;;  %v5493_v38 = vadd.f32 %v5437_v26, %v5142_v57  ;;  %v3765_v16 = vpop.f32.mrb[3].mxu0 }
 0x201   : > { %4027 = vst.msk [vmem:[%s7229_s5] sm:$0xff] %vm444_vm1, %v3989_v45  ;;  %v5494_v60 = vadd.f32 %v3765_v16, %v1654_v20 }
 0x202   : > { %v3992_v15 = vadd.f32 %v5493_v38, %v7224_v11 }
 0x203   : > { %v3991_v32 = vadd.f32 %v5494_v60, %v7224_v11  ;;  %v5440_v36 = vpop.f32.mrb[4].mxu0 }
 0x204   : > { %4030 = vst.msk [vmem:[%s7229_s5 + $0x18] sm:$0xff] %vm444_vm1, %v3992_v15  ;;  %v5495_v53 = vadd.f32 %v5440_v36, %v5145_v3  ;;  %v3775_v50 = vpop.f32.mrb[5].mxu0 }
 0x205   : > { %4029 = vst.msk [vmem:[%s7229_s5 + $0x10] sm:$0xff] %vm444_vm1, %v3991_v32  ;;  %v5496_v58 = vadd.f32 %v3775_v50, %v1664_v10 }
 0x206   : > { %v3994_v43 = vadd.f32 %v5495_v53, %v7224_v11 }
 0x207   : > { %v3993_v49 = vadd.f32 %v5496_v58, %v7224_v11  ;;  %v5443_v41 = vpop.f32.mrb[6].mxu0 }
 0x208   : > { %4032 = vst.msk [vmem:[%s7229_s5 + $0x28] sm:$0xff] %vm444_vm1, %v3994_v43  ;;  %v5497_v24 = vadd.f32 %v5443_v41, %v5148_v55  ;;  %v3785_v13 = vpop.f32.mrb[7].mxu0 }
 0x209   : > { %4031 = vst.msk [vmem:[%s7229_s5 + $0x20] sm:$0xff] %vm444_vm1, %v3993_v49  ;;  %v5498_v63 = vadd.f32 %v3785_v13, %v1674_v12 }
 0x20a   : > { %v3996_v8 = vadd.f32 %v5497_v24, %v7224_v11 }
 0x20b   : > { %v3995_v29 = vadd.f32 %v5498_v63, %v7224_v11  ;;  %v5446_v18 = vpop.f32.mrb[8].mxu0 }
 0x20c   : > { %4034 = vst.msk [vmem:[%s7229_s5 + $0x38] sm:$0xff] %vm444_vm1, %v3996_v8  ;;  %v5499_v17 = vadd.f32 %v5446_v18, %v5151_v23  ;;  %v3795_v37 = vpop.f32.mrb[9].mxu0 }
 0x20d   : > { %4033 = vst.msk [vmem:[%s7229_s5 + $0x30] sm:$0xff] %vm444_vm1, %v3995_v29  ;;  %v5500_v46 = vadd.f32 %v3795_v37, %v1684_v14 }
 0x20e   : > { %v3998_v1 = vadd.f32 %v5499_v17, %v7224_v11 }
 0x20f   : > { %v3997_v35 = vadd.f32 %v5500_v46, %v7224_v11  ;;  %v5449_v39 = vpop.f32.mrb[10].mxu0 }
 0x210   : > { %4036 = vst.msk [vmem:[%s7229_s5 + $0x48] sm:$0xff] %vm444_vm1, %v3998_v1  ;;  %v5501_v25 = vadd.f32 %v5449_v39, %v5154_v19  ;;  %v3805_v59 = vpop.f32.mrb[11].mxu0 }
 0x211   : > { %4035 = vst.msk [vmem:[%s7229_s5 + $0x40] sm:$0xff] %vm444_vm1, %v3997_v35  ;;  %v5502_v56 = vadd.f32 %v3805_v59, %v1694_v61 }
 0x212   : > { %v4000_v6 = vadd.f32 %v5501_v25, %v7224_v11 }
 0x213   : > { %v3999_v31 = vadd.f32 %v5502_v56, %v7224_v11  ;;  %v5452_v5 = vpop.f32.mrb[12].mxu0 }
 0x214   : > { %4038 = vst.msk [vmem:[%s7229_s5 + $0x58] sm:$0xff] %vm444_vm1, %v4000_v6  ;;  %v5503_v52 = vadd.f32 %v5452_v5, %v5157_v34  ;;  %v3815_v40 = vpop.f32.mrb[13].mxu0 }
 0x215   : > { %4037 = vst.msk [vmem:[%s7229_s5 + $0x50] sm:$0xff] %vm444_vm1, %v3999_v31  ;;  %v5504_v0 = vadd.f32 %v3815_v40, %v7205_v33 }
 0x216   : > { %v4002_v21 = vadd.f32 %v5503_v52, %v7224_v11 }
 0x217   : > { %v4001_v62 = vadd.f32 %v5504_v0, %v7224_v11  ;;  %v5455_v4 = vpop.f32.mrb[14].mxu0 }
 0x218   : > { %4040 = vst.msk [vmem:[%s7229_s5 + $0x68] sm:$0xff] %vm444_vm1, %v4002_v21  ;;  %v5505_v7 = vadd.f32 %v5455_v4, %v7207_v27  ;;  %v3825_v44 = vpop.f32.mrb[15].mxu0 }
 0x219   : > { %4039 = vst.msk [vmem:[%s7229_s5 + $0x60] sm:$0xff] %vm444_vm1, %v4001_v62  ;;  %v5506_v57 = vadd.f32 %v3825_v44, %v7209_v30 }
 0x21a   : > { %v4004_v20 = vadd.f32 %v5505_v7, %v7224_v11 }
 0x21b   : > { %v4003_v3 = vadd.f32 %v5506_v57, %v7224_v11  ;;  %v5458_v10 = vpop.f32.mrb[16].mxu0 }
 0x21c   : > { %4042 = vst.msk [vmem:[%s7229_s5 + $0x78] sm:$0xff] %vm444_vm1, %v4004_v20  ;;  %v5507_v55 = vadd.f32 %v5458_v10, %v7212_v42  ;;  %v3835_v12 = vpop.f32.mrb[17].mxu0 }
 0x21d   : > { %4041 = vst.msk [vmem:[%s7229_s5 + $0x70] sm:$0xff] %vm444_vm1, %v4003_v3  ;;  %v5508_v23 = vadd.f32 %v3835_v12, %v7214_v9 }
 0x21e   : > { %v4006_v14 = vadd.f32 %v5507_v55, %v7224_v11 }
 0x21f   : > { %v4005_v19 = vadd.f32 %v5508_v23, %v7224_v11  ;;  %v5228_v61 = vpop.f32.mrb[20].mxu1  ;;  %v5461_v34 = vpop.f32.mrb[18].mxu0 }
 0x220   : > { %4044 = vst.msk [vmem:[%s7229_s5 + $0x88] sm:$0xff] %vm444_vm1, %v4006_v14  ;;  %v5509_v33 = vadd.f32 %v5461_v34, %v7217_v28  ;;  %v2193_v27 = vpop.f32.mrb[21].mxu1  ;;  %v3845_v30 = vpop.f32.mrb[19].mxu0 }
 0x221   : > { %4043 = vst.msk [vmem:[%s7229_s5 + $0x80] sm:$0xff] %vm444_vm1, %v4005_v19  ;;  %v5510_v42 = vadd.f32 %v3845_v30, %v7219_v51 }
 0x222   : > { %v4008_v9 = vadd.f32 %v5509_v33, %v7224_v11 }
 0x223   : > { %v4007_v54 = vadd.f32 %v5510_v42, %v7224_v11  ;;  %v5231_v22 = vpop.f32.mrb[22].mxu1  ;;  %v5464_v48 = vpop.f32.mrb[20].mxu0 }
 0x224   : > { %4046 = vst.msk [vmem:[%s7229_s5 + $0x98] sm:$0xff] %vm444_vm1, %v4008_v9  ;;  %v5511_v2 = vadd.f32 %v5464_v48, %v5228_v61  ;;  %v2203_v47 = vpop.f32.mrb[23].mxu1  ;;  %v3855_v45 = vpop.f32.mrb[21].mxu0 }
 0x225   : > { %4045 = vst.msk [vmem:[%s7229_s5 + $0x90] sm:$0xff] %vm444_vm1, %v4007_v54  ;;  %v5512_v28 = vadd.f32 %v3855_v45, %v2193_v27 }
 0x226   : > { %v4010_v26 = vadd.f32 %v5511_v2, %v7224_v11 }
 0x227   : > { %v4009_v51 = vadd.f32 %v5512_v28, %v7224_v11  ;;  %v5234_v38 = vpop.f32.mrb[24].mxu1  ;;  %v5467_v16 = vpop.f32.mrb[22].mxu0 }
 0x228   : > { %4048 = vst.msk [vmem:[%s7229_s5 + $0xa8] sm:$0xff] %vm444_vm1, %v4010_v26  ;;  %v5513_v60 = vadd.f32 %v5467_v16, %v5231_v22  ;;  %v2213_v15 = vpop.f32.mrb[25].mxu1  ;;  %v3865_v32 = vpop.f32.mrb[23].mxu0 }
 0x229   : > { %4047 = vst.msk [vmem:[%s7229_s5 + $0xa0] sm:$0xff] %vm444_vm1, %v4009_v51  ;;  %v5514_v36 = vadd.f32 %v3865_v32, %v2203_v47 }
 0x22a   : > { %v4012_v53 = vadd.f32 %v5513_v60, %v7224_v11 }
 0x22b   : > { %v4011_v50 = vadd.f32 %v5514_v36, %v7224_v11  ;;  %v5237_v58 = vpop.f32.mrb[26].mxu1  ;;  %v5470_v43 = vpop.f32.mrb[24].mxu0 }
 0x22c   : > { %4050 = vst.msk [vmem:[%s7229_s5 + $0xb8] sm:$0xff] %vm444_vm1, %v4012_v53  ;;  %v5515_v49 = vadd.f32 %v5470_v43, %v5234_v38  ;;  %v2223_v41 = vpop.f32.mrb[27].mxu1  ;;  %v3875_v24 = vpop.f32.mrb[25].mxu0 }
 0x22d   : > { %4049 = vst.msk [vmem:[%s7229_s5 + $0xb0] sm:$0xff] %vm444_vm1, %v4011_v50  ;;  %v5516_v13 = vadd.f32 %v3875_v24, %v2213_v15 }
 0x22e   : > { %v4014_v63 = vadd.f32 %v5515_v49, %v7224_v11 }
 0x22f   : > { %v4013_v8 = vadd.f32 %v5516_v13, %v7224_v11  ;;  %v5240_v29 = vpop.f32.mrb[28].mxu1  ;;  %v5473_v18 = vpop.f32.mrb[26].mxu0 }
 0x230   : > { %4052 = vst.msk [vmem:[%s7229_s5 + $0xc8] sm:$0xff] %vm444_vm1, %v4014_v63  ;;  %v5517_v17 = vadd.f32 %v5473_v18, %v5237_v58  ;;  %v2233_v37 = vpop.f32.mrb[29].mxu1  ;;  %v3885_v46 = vpop.f32.mrb[27].mxu0 }
 0x231   : > { %4051 = vst.msk [vmem:[%s7229_s5 + $0xc0] sm:$0xff] %vm444_vm1, %v4013_v8  ;;  %v5518_v1 = vadd.f32 %v3885_v46, %v2223_v41 }
 0x232   : > { %v4016_v35 = vadd.f32 %v5517_v17, %v7224_v11 }
 0x233   : > { %v4015_v39 = vadd.f32 %v5518_v1, %v7224_v11  ;;  %v5243_v25 = vpop.f32.mrb[30].mxu1  ;;  %v5476_v59 = vpop.f32.mrb[28].mxu0 }
 0x234   : > { %4054 = vst.msk [vmem:[%s7229_s5 + $0xd8] sm:$0xff] %vm444_vm1, %v4016_v35  ;;  %v5519_v56 = vadd.f32 %v5476_v59, %v5240_v29  ;;  %v2243_v6 = vpop.f32.mrb[31].mxu1  ;;  %v3895_v31 = vpop.f32.mrb[29].mxu0 }
 0x235   : > { %4053 = vst.msk [vmem:[%s7229_s5 + $0xd0] sm:$0xff] %vm444_vm1, %v4015_v39  ;;  %v5520_v5 = vadd.f32 %v3895_v31, %v2233_v37 }
 0x236   : > { %v4018_v52 = vadd.f32 %v5519_v56, %v7224_v11 }
 0x237   : > { %v4017_v40 = vadd.f32 %v5520_v5, %v7224_v11  ;;  %v5246_v0 = vpop.f32.mrb[32].mxu1  ;;  %v5479_v21 = vpop.f32.mrb[30].mxu0 }
 0x238   : > { %4056 = vst.msk [vmem:[%s7229_s5 + $0xe8] sm:$0xff] %vm444_vm1, %v4018_v52  ;;  %v5521_v62 = vadd.f32 %v5479_v21, %v5243_v25  ;;  %v2253_v4 = vpop.f32.mrb[33].mxu1  ;;  %v3905_v7 = vpop.f32.mrb[31].mxu0 }
 0x239   : > { %4055 = vst.msk [vmem:[%s7229_s5 + $0xe0] sm:$0xff] %vm444_vm1, %v4017_v40  ;;  %v5522_v44 = vadd.f32 %v3905_v7, %v2243_v6 }
 0x23a   : > { %v4020_v57 = vadd.f32 %v5521_v62, %v7224_v11 }
 0x23b   : > { %v4019_v20 = vadd.f32 %v5522_v44, %v7224_v11  ;;  %v5249_v3 = vpop.f32.mrb[34].mxu1  ;;  %v5482_v10 = vpop.f32.mrb[32].mxu0 }
 0x23c   : > { %4058 = vst.msk [vmem:[%s7229_s5 + $0xf8] sm:$0xff] %vm444_vm1, %v4020_v57  ;;  %v5523_v55 = vadd.f32 %v5482_v10, %v5246_v0  ;;  %v2263_v12 = vpop.f32.mrb[35].mxu1  ;;  %v3915_v23 = vpop.f32.mrb[33].mxu0 }
 0x23d   : > { %4057 = vst.msk [vmem:[%s7229_s5 + $0xf0] sm:$0xff] %vm444_vm1, %v4019_v20  ;;  %v5524_v14 = vadd.f32 %v3915_v23, %v2253_v4 }
 0x23e   : > { %v4022_v19 = vadd.f32 %v5523_v55, %v7224_v11 }
 0x23f   : > { %v4021_v61 = vadd.f32 %v5524_v14, %v7224_v11  ;;  %v5252_v34 = vpop.f32.mrb[36].mxu1  ;;  %v5485_v33 = vpop.f32.mrb[34].mxu0 }
 0x240   : > { %4060 = vst.msk [vmem:[%s7229_s5 + $0x108] sm:$0xff] %vm444_vm1, %v4022_v19  ;;  %v5525_v27 = vadd.f32 %v5485_v33, %v5249_v3  ;;  %v2273_v30 = vpop.f32.mrb[37].mxu1  ;;  %v3925_v42 = vpop.f32.mrb[35].mxu0 }
 0x241   : > { %4059 = vst.msk [vmem:[%s7229_s5 + $0x100] sm:$0xff] %vm444_vm1, %v4021_v61  ;;  %v5526_v9 = vadd.f32 %v3925_v42, %v2263_v12 }
 0x242   : > { %v4024_v54 = vadd.f32 %v5525_v27, %v7224_v11 }
 0x243   : > { %v4023_v22 = vadd.f32 %v5526_v9, %v7224_v11  ;;  %v5488_v48 = vpop.f32.mrb[36].mxu0 }
 0x244   : > { %4062 = vst.msk [vmem:[%s7229_s5 + $0x118] sm:$0xff] %vm444_vm1, %v4024_v54  ;;  %v5527_v2 = vadd.f32 %v5488_v48, %v5252_v34  ;;  %v3935_v47 = vpop.f32.mrb[37].mxu0 }
 0x245   : > { %4061 = vst.msk [vmem:[%s7229_s5 + $0x110] sm:$0xff] %vm444_vm1, %v4023_v22  ;;  %v5528_v45 = vadd.f32 %v3935_v47, %v2273_v30 }
 0x246   : > { %v4026_v28 = vadd.f32 %v5527_v2, %v7224_v11 }
 0x247   : > { %v4025_v26 = vadd.f32 %v5528_v45, %v7224_v11 }
 0x248   : > { %4064 = vst.msk [vmem:[%s7229_s5 + $0x128] sm:$0xff] %vm444_vm1, %v4026_v28 }
 0x249   : > { %4063 = vst.msk [vmem:[%s7229_s5 + $0x120] sm:$0xff] %vm444_vm1, %v4025_v26 }
 0x24a PF: > { %s14_s15 = sadd.s32 1, %s5810_s15  }
 0x24b   : > { %p11_p6 = scmp.ge.s32.totalorder %s14_s15, 10  }
 0x24d   :  { %13 = sbr.rel (!%p11_p6) target bundleno = 1 (0x1), region = 77 }

</bundles_post_ra>
